<compile_context>
chip_gen: v6e
topology: v6e:2x2x1
jax: 0.10.0
libtpu: 0.0.40
codegen_flags: <defaults>
</compile_context>

<pallas_src>
import functools

import jax
import jax.numpy as jnp
from jax.experimental import pallas as pl

LN_EPS = 1e-12   # DistilBERT LayerNorm eps
LANE = 128       # TPU lane width (lane-dense output padding)


def _layernorm(h, gamma, beta):
    mu = jnp.mean(h, axis=-1, keepdims=True)
    var = jnp.mean((h - mu) ** 2, axis=-1, keepdims=True)
    return (h - mu) * jax.lax.rsqrt(var + LN_EPS) * gamma + beta


def transformer_cls_kernel(x_ref, wqkv_ref, wo_ref, w1_ref, w2_ref,
                           bqkv_ref, b1_ref, vec_ref, wclf_ref, bclf_ref,
                           out_ref, *, n_layers, n_heads):
    B, S, D = x_ref.shape
    BS = B * S
    dh = D // n_heads
    inv_sqrt_dh = 1.0 / jnp.sqrt(jnp.float32(dh))
    inv_sqrt2 = 1.0 / jnp.sqrt(jnp.float32(2.0))
    bf16 = jnp.bfloat16

    # Activations live in VMEM/vregs for the whole network, flattened to (B*S, D).
    h = x_ref[...].reshape(BS, D)

    for l in range(n_layers):                       # static unroll over layers
        wqkv = wqkv_ref[l]                          # (D, 3D) bf16
        wo = wo_ref[l]                              # (D, D)  f32 (sliced per head)
        vec = vec_ref[l]                            # (6, D)  f32 packed vectors
        bo, g1, be1 = vec[0:1, :], vec[1:2, :], vec[2:3, :]
        b2, g2, be2 = vec[3:4, :], vec[4:5, :], vec[5:6, :]

        # ---- fused QKV projection over flattened activations ----
        qkv = jnp.dot(h.astype(bf16), wqkv,
                      preferred_element_type=jnp.float32) + bqkv_ref[l]   # (BS, 3D) f32
        qkv3 = qkv.reshape(B, S, 3 * D)

        # ---- multi-head attention; heads accumulated straight into the out-proj
        #      (no per-head concatenate) ----
        sa = jnp.zeros((BS, D), jnp.float32)
        for hd in range(n_heads):                   # static unroll over heads
            lo = hd * dh
            q3 = qkv3[:, :, lo:lo + dh] * inv_sqrt_dh            # (B, S, dh)
            k3 = qkv3[:, :, D + lo:D + lo + dh]
            v3 = qkv3[:, :, 2 * D + lo:2 * D + lo + dh]
            s = jnp.einsum('bqd,bkd->bqk', q3.astype(bf16), k3.astype(bf16),
                           preferred_element_type=jnp.float32)   # (B, S, S)
            # attn_mask is all ones in the module => no masking needed.
            s = s - jnp.max(s, axis=-1, keepdims=True)
            e = jnp.exp(s)
            p = e * pl.reciprocal(jnp.sum(e, axis=-1, keepdims=True), approx=True)
            ctx = jnp.einsum('bqk,bkd->bqd', p.astype(bf16), v3.astype(bf16),
                             preferred_element_type=jnp.float32)  # (B, S, dh)
            wo_h = wo[lo:lo + dh, :].astype(bf16)                 # aligned (dh, D) slice
            sa = sa + jnp.dot(ctx.reshape(BS, dh).astype(bf16), wo_h,
                              preferred_element_type=jnp.float32)
        sa = sa + bo
        # TODO(synk): dropout / attention-dropout are identity here (eval-mode semantics).
        h = _layernorm(sa + h, g1, be1)

        # ---- FFN ----
        f = jnp.dot(h.astype(bf16), w1_ref[l],
                    preferred_element_type=jnp.float32) + b1_ref[l]
        f = 0.5 * f * (1.0 + jax.lax.erf(f * inv_sqrt2))          # exact (erf) GELU, f32
        f = jnp.dot(f.astype(bf16), w2_ref[l],
                    preferred_element_type=jnp.float32) + b2
        h = _layernorm(f + h, g2, be2)

    # ---- fused classifier on every token; output is a lane-dense (BS, 128) slab.
    #      The wrapper keeps token 0 and the first num_classes columns. ----
    out_ref[...] = jnp.dot(h.astype(bf16), wclf_ref[...],
                           preferred_element_type=jnp.float32) + bclf_ref[...]


def transformer_cls_forward(x, params, n_heads, num_classes):
    B, S, D = x.shape
    n_layers = params['wqkv'].shape[0]
    c_pad = params['clf_w'].shape[1]
    out = pl.pallas_call(
        functools.partial(transformer_cls_kernel,
                          n_layers=n_layers, n_heads=n_heads),
        out_shape=jax.ShapeDtypeStruct((B * S, c_pad), jnp.float32),
    )(x, params['wqkv'], params['wo'], params['w1'], params['w2'],
      params['bqkv'], params['b1'], params['vec'],
      params['clf_w'], params['clf_b'])
    logits = out.reshape(B, S, c_pad)[:, 0, :num_classes]   # pool=None -> first token
    return logits[..., 0] if num_classes == 1 else logits


def init_params(key, embedding_dim, hidden_dim, n_layers, num_classes):
    D, H = embedding_dim, hidden_dim
    c_pad = ((num_classes + LANE - 1) // LANE) * LANE

    def rnd(k, shape, scale=0.02):
        return scale * jax.random.normal(k, shape, jnp.float32)

    wqkv, wo, w1, w2, bqkv, b1, vec = [], [], [], [], [], [], []
    for _ in range(n_layers):
        key, *ks = jax.random.split(key, 13)
        # Linear weights stored as (in, out) so the kernel does x @ W (= x @ W_pt^T).
        wqkv.append(jnp.concatenate(
            [rnd(ks[0], (D, D)), rnd(ks[1], (D, D)), rnd(ks[2], (D, D))], axis=1))
        bqkv.append(jnp.concatenate(
            [rnd(ks[3], (1, D), 0.01), rnd(ks[4], (1, D), 0.01),
             rnd(ks[5], (1, D), 0.01)], axis=1))
        wo.append(rnd(ks[6], (D, D)))
        w1.append(rnd(ks[7], (D, H)))
        b1.append(rnd(ks[8], (1, H), 0.01))
        w2.append(rnd(ks[9], (H, D)))
        # packed per-layer vectors: [bo, ln1_gamma, ln1_beta, ffn_b2, ln2_gamma, ln2_beta]
        vec.append(jnp.concatenate(
            [rnd(ks[10], (1, D), 0.01),
             jnp.ones((1, D), jnp.float32), jnp.zeros((1, D), jnp.float32),
             rnd(ks[11], (1, D), 0.01),
             jnp.ones((1, D), jnp.float32), jnp.zeros((1, D), jnp.float32)], axis=0))

    key, kw, kb = jax.random.split(key, 3)
    clf_w = jnp.zeros((D, c_pad), jnp.float32).at[:, :num_classes].set(
        rnd(kw, (D, num_classes)))
    clf_b = jnp.zeros((1, c_pad), jnp.float32).at[:, :num_classes].set(
        rnd(kb, (1, num_classes), 0.01))

    return {
        # Big matmul weights stored bf16 (MXU-native, halves weight DMA bytes);
        # wo stays f32 so its per-head row slices are sublane-aligned;
        # bias / LayerNorm vectors stay f32 (elementwise math in f32).
        'wqkv': jnp.stack(wqkv).astype(jnp.bfloat16),   # (L, D, 3D)
        'wo':   jnp.stack(wo),                          # (L, D, D)  f32
        'w1':   jnp.stack(w1).astype(jnp.bfloat16),     # (L, D, H)
        'w2':   jnp.stack(w2).astype(jnp.bfloat16),     # (L, H, D)
        'bqkv': jnp.stack(bqkv),                        # (L, 1, 3D) f32
        'b1':   jnp.stack(b1),                          # (L, 1, H)  f32
        'vec':  jnp.stack(vec),                         # (L, 6, D)  f32
        'clf_w': clf_w.astype(jnp.bfloat16),            # (D, c_pad) lane-dense
        'clf_b': clf_b,                                 # (1, c_pad) f32
    }


if __name__ == "__main__":
    # Small shapes consistent with the module's (B, S, embedding_dim) input.
    B, S = 2, 8
    embedding_dim, hidden_dim = 32, 64
    n_layers, n_heads, num_classes = 2, 4, 3

    key = jax.random.PRNGKey(0)
    kx, kp = jax.random.split(key)
    x = jax.random.normal(kx, (B, S, embedding_dim), jnp.float32)
    params = init_params(kp, embedding_dim, hidden_dim, n_layers, num_classes)

    out = transformer_cls_forward(x, params, n_heads, num_classes)
    out = jax.block_until_ready(out)
    assert out.shape == (B, num_classes), out.shape
    print("KERNEL_OK")
</pallas_src>

<mosaic_0001>
module attributes {stable_mosaic.version = 11 : i64} {
  func.func @transformer_cls_kernel(%arg0: memref<2x8x32xf32, #tpu.memory_space<vmem>>, %arg1: memref<2x32x96xbf16, #tpu.memory_space<vmem>>, %arg2: memref<2x32x32xf32, #tpu.memory_space<vmem>>, %arg3: memref<2x32x64xbf16, #tpu.memory_space<vmem>>, %arg4: memref<2x64x32xbf16, #tpu.memory_space<vmem>>, %arg5: memref<2x1x96xf32, #tpu.memory_space<vmem>>, %arg6: memref<2x1x64xf32, #tpu.memory_space<vmem>>, %arg7: memref<2x6x32xf32, #tpu.memory_space<vmem>>, %arg8: memref<32x128xbf16, #tpu.memory_space<vmem>>, %arg9: memref<1x128xf32, #tpu.memory_space<vmem>>, %arg10: memref<16x128xf32, #tpu.memory_space<vmem>>) attributes {dimension_semantics = [], scalar_prefetch = 0 : i64, scratch_operands = 0 : i64, tpu.core_type = #tpu.core_type<tc>} {
    %cst = arith.constant 8.000000e+00 : f32
    %0 = math.sqrt %cst : f32
    %cst_0 = arith.constant 1.000000e+00 : f32
    %1 = arith.divf %cst_0, %0 : f32
    %cst_1 = arith.constant 2.000000e+00 : f32
    %2 = math.sqrt %cst_1 : f32
    %cst_2 = arith.constant 1.000000e+00 : f32
    %3 = arith.divf %cst_2, %2 : f32
    %c0 = arith.constant 0 : index
    %c0_3 = arith.constant 0 : index
    %c0_4 = arith.constant 0 : index
    %4 = vector.load %arg0[%c0, %c0_3, %c0_4] : memref<2x8x32xf32, #tpu.memory_space<vmem>>, vector<2x8x32xf32>
    %5 = vector.shape_cast %4 : vector<2x8x32xf32> to vector<16x32xf32>
    %c0_5 = arith.constant 0 : index
    %c0_6 = arith.constant 0 : index
    %c0_7 = arith.constant 0 : index
    %6 = vector.load %arg1[%c0_5, %c0_6, %c0_7] : memref<2x32x96xbf16, #tpu.memory_space<vmem>>, vector<1x32x96xbf16>
    %7 = vector.shape_cast %6 : vector<1x32x96xbf16> to vector<32x96xbf16>
    %c0_8 = arith.constant 0 : index
    %c0_9 = arith.constant 0 : index
    %c0_10 = arith.constant 0 : index
    %8 = vector.load %arg2[%c0_8, %c0_9, %c0_10] : memref<2x32x32xf32, #tpu.memory_space<vmem>>, vector<1x32x32xf32>
    %9 = vector.shape_cast %8 : vector<1x32x32xf32> to vector<32x32xf32>
    %c0_11 = arith.constant 0 : index
    %c0_12 = arith.constant 0 : index
    %c0_13 = arith.constant 0 : index
    %10 = vector.load %arg7[%c0_11, %c0_12, %c0_13] : memref<2x6x32xf32, #tpu.memory_space<vmem>>, vector<1x6x32xf32>
    %11 = vector.shape_cast %10 : vector<1x6x32xf32> to vector<6x32xf32>
    %12 = vector.extract_strided_slice %11 {offsets = [0, 0], sizes = [1, 32], strides = [1, 1]} : vector<6x32xf32> to vector<1x32xf32>
    %13 = vector.extract_strided_slice %11 {offsets = [1, 0], sizes = [1, 32], strides = [1, 1]} : vector<6x32xf32> to vector<1x32xf32>
    %14 = vector.extract_strided_slice %11 {offsets = [2, 0], sizes = [1, 32], strides = [1, 1]} : vector<6x32xf32> to vector<1x32xf32>
    %15 = vector.extract_strided_slice %11 {offsets = [3, 0], sizes = [1, 32], strides = [1, 1]} : vector<6x32xf32> to vector<1x32xf32>
    %16 = vector.extract_strided_slice %11 {offsets = [4, 0], sizes = [1, 32], strides = [1, 1]} : vector<6x32xf32> to vector<1x32xf32>
    %17 = vector.extract_strided_slice %11 {offsets = [5, 0], sizes = [1, 32], strides = [1, 1]} : vector<6x32xf32> to vector<1x32xf32>
    %18 = arith.truncf %5 : vector<16x32xf32> to vector<16x32xbf16>
    %cst_14 = arith.constant dense<0.000000e+00> : vector<16x96xf32>
    %19 = tpu.matmul %18, %7, %cst_14 {dimension_numbers = #tpu.dot_dimension_numbers<[1], [0], [0], [1], [0, 0, 1, 1], [], []>} : vector<16x32xbf16>, vector<32x96xbf16>, vector<16x96xf32> -> vector<16x96xf32>
    %c0_15 = arith.constant 0 : index
    %c0_16 = arith.constant 0 : index
    %c0_17 = arith.constant 0 : index
    %20 = vector.load %arg5[%c0_15, %c0_16, %c0_17] : memref<2x1x96xf32, #tpu.memory_space<vmem>>, vector<1x1x96xf32>
    %21 = vector.shape_cast %20 : vector<1x1x96xf32> to vector<1x96xf32>
    %22 = vector.broadcast %21 : vector<1x96xf32> to vector<16x96xf32>
    %23 = arith.addf %19, %22 : vector<16x96xf32>
    %24 = vector.shape_cast %23 : vector<16x96xf32> to vector<2x8x96xf32>
    %cst_18 = arith.constant 0.000000e+00 : f32
    %25 = vector.broadcast %cst_18 : f32 to vector<16x32xf32>
    %26 = vector.extract_strided_slice %24 {offsets = [0, 0, 0], sizes = [2, 8, 8], strides = [1, 1, 1]} : vector<2x8x96xf32> to vector<2x8x8xf32>
    %27 = vector.broadcast %1 : f32 to vector<2x8x8xf32>
    %28 = arith.mulf %26, %27 : vector<2x8x8xf32>
    %29 = vector.extract_strided_slice %24 {offsets = [0, 0, 32], sizes = [2, 8, 8], strides = [1, 1, 1]} : vector<2x8x96xf32> to vector<2x8x8xf32>
    %30 = vector.extract_strided_slice %24 {offsets = [0, 0, 64], sizes = [2, 8, 8], strides = [1, 1, 1]} : vector<2x8x96xf32> to vector<2x8x8xf32>
    %31 = arith.truncf %28 : vector<2x8x8xf32> to vector<2x8x8xbf16>
    %32 = arith.truncf %29 : vector<2x8x8xf32> to vector<2x8x8xbf16>
    "tpu.trace_start"() <{level = 10 : i32, message = "bqd,bkd->bqk"}> : () -> ()
    %cst_19 = arith.constant dense<0.000000e+00> : vector<2x8x8xf32>
    %33 = tpu.matmul %31, %32, %cst_19 {dimension_numbers = #tpu.dot_dimension_numbers<[2], [2], [1], [1], [0, 0, 0, 1, 1, 1], [0], [0]>} : vector<2x8x8xbf16>, vector<2x8x8xbf16>, vector<2x8x8xf32> -> vector<2x8x8xf32>
    "tpu.trace_stop"() : () -> ()
    %cst_20 = arith.constant dense<0xFF800000> : vector<2x8xf32>
    %34 = vector.multi_reduction <maximumf>, %33, %cst_20 [2] : vector<2x8x8xf32> to vector<2x8xf32>
    %35 = vector.shape_cast %34 : vector<2x8xf32> to vector<2x8x1xf32>
    %36 = vector.broadcast %35 : vector<2x8x1xf32> to vector<2x8x8xf32>
    %37 = arith.subf %33, %36 : vector<2x8x8xf32>
    %38 = math.exp %37 : vector<2x8x8xf32>
    %cst_21 = arith.constant dense<0.000000e+00> : vector<2x8xf32>
    %39 = vector.multi_reduction <add>, %38, %cst_21 [2] : vector<2x8x8xf32> to vector<2x8xf32>
    %40 = vector.shape_cast %39 : vector<2x8xf32> to vector<2x8x1xf32>
    %41 = tpu.reciprocal %40 {approx = true} : vector<2x8x1xf32> -> vector<2x8x1xf32>
    %42 = vector.broadcast %41 : vector<2x8x1xf32> to vector<2x8x8xf32>
    %43 = arith.mulf %38, %42 : vector<2x8x8xf32>
    %44 = arith.truncf %43 : vector<2x8x8xf32> to vector<2x8x8xbf16>
    %45 = arith.truncf %30 : vector<2x8x8xf32> to vector<2x8x8xbf16>
    "tpu.trace_start"() <{level = 10 : i32, message = "bqk,bkd->bqd"}> : () -> ()
    %cst_22 = arith.constant dense<0.000000e+00> : vector<2x8x8xf32>
    %46 = tpu.matmul %44, %45, %cst_22 {dimension_numbers = #tpu.dot_dimension_numbers<[2], [1], [1], [2], [0, 0, 0, 1, 1, 2], [0], [0]>} : vector<2x8x8xbf16>, vector<2x8x8xbf16>, vector<2x8x8xf32> -> vector<2x8x8xf32>
    "tpu.trace_stop"() : () -> ()
    %47 = vector.extract_strided_slice %9 {offsets = [0, 0], sizes = [8, 32], strides = [1, 1]} : vector<32x32xf32> to vector<8x32xf32>
    %48 = arith.truncf %47 : vector<8x32xf32> to vector<8x32xbf16>
    %49 = vector.shape_cast %46 : vector<2x8x8xf32> to vector<16x8xf32>
    %50 = arith.truncf %49 : vector<16x8xf32> to vector<16x8xbf16>
    %cst_23 = arith.constant dense<0.000000e+00> : vector<16x32xf32>
    %51 = tpu.matmul %50, %48, %cst_23 {dimension_numbers = #tpu.dot_dimension_numbers<[1], [0], [0], [1], [0, 0, 1, 1], [], []>} : vector<16x8xbf16>, vector<8x32xbf16>, vector<16x32xf32> -> vector<16x32xf32>
    %52 = arith.addf %25, %51 : vector<16x32xf32>
    %53 = vector.extract_strided_slice %24 {offsets = [0, 0, 8], sizes = [2, 8, 8], strides = [1, 1, 1]} : vector<2x8x96xf32> to vector<2x8x8xf32>
    %54 = vector.broadcast %1 : f32 to vector<2x8x8xf32>
    %55 = arith.mulf %53, %54 : vector<2x8x8xf32>
    %56 = vector.extract_strided_slice %24 {offsets = [0, 0, 40], sizes = [2, 8, 8], strides = [1, 1, 1]} : vector<2x8x96xf32> to vector<2x8x8xf32>
    %57 = vector.extract_strided_slice %24 {offsets = [0, 0, 72], sizes = [2, 8, 8], strides = [1, 1, 1]} : vector<2x8x96xf32> to vector<2x8x8xf32>
    %58 = arith.truncf %55 : vector<2x8x8xf32> to vector<2x8x8xbf16>
    %59 = arith.truncf %56 : vector<2x8x8xf32> to vector<2x8x8xbf16>
    "tpu.trace_start"() <{level = 10 : i32, message = "bqd,bkd->bqk"}> : () -> ()
    %cst_24 = arith.constant dense<0.000000e+00> : vector<2x8x8xf32>
    %60 = tpu.matmul %58, %59, %cst_24 {dimension_numbers = #tpu.dot_dimension_numbers<[2], [2], [1], [1], [0, 0, 0, 1, 1, 1], [0], [0]>} : vector<2x8x8xbf16>, vector<2x8x8xbf16>, vector<2x8x8xf32> -> vector<2x8x8xf32>
    "tpu.trace_stop"() : () -> ()
    %cst_25 = arith.constant dense<0xFF800000> : vector<2x8xf32>
    %61 = vector.multi_reduction <maximumf>, %60, %cst_25 [2] : vector<2x8x8xf32> to vector<2x8xf32>
    %62 = vector.shape_cast %61 : vector<2x8xf32> to vector<2x8x1xf32>
    %63 = vector.broadcast %62 : vector<2x8x1xf32> to vector<2x8x8xf32>
    %64 = arith.subf %60, %63 : vector<2x8x8xf32>
    %65 = math.exp %64 : vector<2x8x8xf32>
    %cst_26 = arith.constant dense<0.000000e+00> : vector<2x8xf32>
    %66 = vector.multi_reduction <add>, %65, %cst_26 [2] : vector<2x8x8xf32> to vector<2x8xf32>
    %67 = vector.shape_cast %66 : vector<2x8xf32> to vector<2x8x1xf32>
    %68 = tpu.reciprocal %67 {approx = true} : vector<2x8x1xf32> -> vector<2x8x1xf32>
    %69 = vector.broadcast %68 : vector<2x8x1xf32> to vector<2x8x8xf32>
    %70 = arith.mulf %65, %69 : vector<2x8x8xf32>
    %71 = arith.truncf %70 : vector<2x8x8xf32> to vector<2x8x8xbf16>
    %72 = arith.truncf %57 : vector<2x8x8xf32> to vector<2x8x8xbf16>
    "tpu.trace_start"() <{level = 10 : i32, message = "bqk,bkd->bqd"}> : () -> ()
    %cst_27 = arith.constant dense<0.000000e+00> : vector<2x8x8xf32>
    %73 = tpu.matmul %71, %72, %cst_27 {dimension_numbers = #tpu.dot_dimension_numbers<[2], [1], [1], [2], [0, 0, 0, 1, 1, 2], [0], [0]>} : vector<2x8x8xbf16>, vector<2x8x8xbf16>, vector<2x8x8xf32> -> vector<2x8x8xf32>
    "tpu.trace_stop"() : () -> ()
    %74 = vector.extract_strided_slice %9 {offsets = [8, 0], sizes = [8, 32], strides = [1, 1]} : vector<32x32xf32> to vector<8x32xf32>
    %75 = arith.truncf %74 : vector<8x32xf32> to vector<8x32xbf16>
    %76 = vector.shape_cast %73 : vector<2x8x8xf32> to vector<16x8xf32>
    %77 = arith.truncf %76 : vector<16x8xf32> to vector<16x8xbf16>
    %cst_28 = arith.constant dense<0.000000e+00> : vector<16x32xf32>
    %78 = tpu.matmul %77, %75, %cst_28 {dimension_numbers = #tpu.dot_dimension_numbers<[1], [0], [0], [1], [0, 0, 1, 1], [], []>} : vector<16x8xbf16>, vector<8x32xbf16>, vector<16x32xf32> -> vector<16x32xf32>
    %79 = arith.addf %52, %78 : vector<16x32xf32>
    %80 = vector.extract_strided_slice %24 {offsets = [0, 0, 16], sizes = [2, 8, 8], strides = [1, 1, 1]} : vector<2x8x96xf32> to vector<2x8x8xf32>
    %81 = vector.broadcast %1 : f32 to vector<2x8x8xf32>
    %82 = arith.mulf %80, %81 : vector<2x8x8xf32>
    %83 = vector.extract_strided_slice %24 {offsets = [0, 0, 48], sizes = [2, 8, 8], strides = [1, 1, 1]} : vector<2x8x96xf32> to vector<2x8x8xf32>
    %84 = vector.extract_strided_slice %24 {offsets = [0, 0, 80], sizes = [2, 8, 8], strides = [1, 1, 1]} : vector<2x8x96xf32> to vector<2x8x8xf32>
    %85 = arith.truncf %82 : vector<2x8x8xf32> to vector<2x8x8xbf16>
    %86 = arith.truncf %83 : vector<2x8x8xf32> to vector<2x8x8xbf16>
    "tpu.trace_start"() <{level = 10 : i32, message = "bqd,bkd->bqk"}> : () -> ()
    %cst_29 = arith.constant dense<0.000000e+00> : vector<2x8x8xf32>
    %87 = tpu.matmul %85, %86, %cst_29 {dimension_numbers = #tpu.dot_dimension_numbers<[2], [2], [1], [1], [0, 0, 0, 1, 1, 1], [0], [0]>} : vector<2x8x8xbf16>, vector<2x8x8xbf16>, vector<2x8x8xf32> -> vector<2x8x8xf32>
    "tpu.trace_stop"() : () -> ()
    %cst_30 = arith.constant dense<0xFF800000> : vector<2x8xf32>
    %88 = vector.multi_reduction <maximumf>, %87, %cst_30 [2] : vector<2x8x8xf32> to vector<2x8xf32>
    %89 = vector.shape_cast %88 : vector<2x8xf32> to vector<2x8x1xf32>
    %90 = vector.broadcast %89 : vector<2x8x1xf32> to vector<2x8x8xf32>
    %91 = arith.subf %87, %90 : vector<2x8x8xf32>
    %92 = math.exp %91 : vector<2x8x8xf32>
    %cst_31 = arith.constant dense<0.000000e+00> : vector<2x8xf32>
    %93 = vector.multi_reduction <add>, %92, %cst_31 [2] : vector<2x8x8xf32> to vector<2x8xf32>
    %94 = vector.shape_cast %93 : vector<2x8xf32> to vector<2x8x1xf32>
    %95 = tpu.reciprocal %94 {approx = true} : vector<2x8x1xf32> -> vector<2x8x1xf32>
    %96 = vector.broadcast %95 : vector<2x8x1xf32> to vector<2x8x8xf32>
    %97 = arith.mulf %92, %96 : vector<2x8x8xf32>
    %98 = arith.truncf %97 : vector<2x8x8xf32> to vector<2x8x8xbf16>
    %99 = arith.truncf %84 : vector<2x8x8xf32> to vector<2x8x8xbf16>
    "tpu.trace_start"() <{level = 10 : i32, message = "bqk,bkd->bqd"}> : () -> ()
    %cst_32 = arith.constant dense<0.000000e+00> : vector<2x8x8xf32>
    %100 = tpu.matmul %98, %99, %cst_32 {dimension_numbers = #tpu.dot_dimension_numbers<[2], [1], [1], [2], [0, 0, 0, 1, 1, 2], [0], [0]>} : vector<2x8x8xbf16>, vector<2x8x8xbf16>, vector<2x8x8xf32> -> vector<2x8x8xf32>
    "tpu.trace_stop"() : () -> ()
    %101 = vector.extract_strided_slice %9 {offsets = [16, 0], sizes = [8, 32], strides = [1, 1]} : vector<32x32xf32> to vector<8x32xf32>
    %102 = arith.truncf %101 : vector<8x32xf32> to vector<8x32xbf16>
    %103 = vector.shape_cast %100 : vector<2x8x8xf32> to vector<16x8xf32>
    %104 = arith.truncf %103 : vector<16x8xf32> to vector<16x8xbf16>
    %cst_33 = arith.constant dense<0.000000e+00> : vector<16x32xf32>
    %105 = tpu.matmul %104, %102, %cst_33 {dimension_numbers = #tpu.dot_dimension_numbers<[1], [0], [0], [1], [0, 0, 1, 1], [], []>} : vector<16x8xbf16>, vector<8x32xbf16>, vector<16x32xf32> -> vector<16x32xf32>
    %106 = arith.addf %79, %105 : vector<16x32xf32>
    %107 = vector.extract_strided_slice %24 {offsets = [0, 0, 24], sizes = [2, 8, 8], strides = [1, 1, 1]} : vector<2x8x96xf32> to vector<2x8x8xf32>
    %108 = vector.broadcast %1 : f32 to vector<2x8x8xf32>
    %109 = arith.mulf %107, %108 : vector<2x8x8xf32>
    %110 = vector.extract_strided_slice %24 {offsets = [0, 0, 56], sizes = [2, 8, 8], strides = [1, 1, 1]} : vector<2x8x96xf32> to vector<2x8x8xf32>
    %111 = vector.extract_strided_slice %24 {offsets = [0, 0, 88], sizes = [2, 8, 8], strides = [1, 1, 1]} : vector<2x8x96xf32> to vector<2x8x8xf32>
    %112 = arith.truncf %109 : vector<2x8x8xf32> to vector<2x8x8xbf16>
    %113 = arith.truncf %110 : vector<2x8x8xf32> to vector<2x8x8xbf16>
    "tpu.trace_start"() <{level = 10 : i32, message = "bqd,bkd->bqk"}> : () -> ()
    %cst_34 = arith.constant dense<0.000000e+00> : vector<2x8x8xf32>
    %114 = tpu.matmul %112, %113, %cst_34 {dimension_numbers = #tpu.dot_dimension_numbers<[2], [2], [1], [1], [0, 0, 0, 1, 1, 1], [0], [0]>} : vector<2x8x8xbf16>, vector<2x8x8xbf16>, vector<2x8x8xf32> -> vector<2x8x8xf32>
    "tpu.trace_stop"() : () -> ()
    %cst_35 = arith.constant dense<0xFF800000> : vector<2x8xf32>
    %115 = vector.multi_reduction <maximumf>, %114, %cst_35 [2] : vector<2x8x8xf32> to vector<2x8xf32>
    %116 = vector.shape_cast %115 : vector<2x8xf32> to vector<2x8x1xf32>
    %117 = vector.broadcast %116 : vector<2x8x1xf32> to vector<2x8x8xf32>
    %118 = arith.subf %114, %117 : vector<2x8x8xf32>
    %119 = math.exp %118 : vector<2x8x8xf32>
    %cst_36 = arith.constant dense<0.000000e+00> : vector<2x8xf32>
    %120 = vector.multi_reduction <add>, %119, %cst_36 [2] : vector<2x8x8xf32> to vector<2x8xf32>
    %121 = vector.shape_cast %120 : vector<2x8xf32> to vector<2x8x1xf32>
    %122 = tpu.reciprocal %121 {approx = true} : vector<2x8x1xf32> -> vector<2x8x1xf32>
    %123 = vector.broadcast %122 : vector<2x8x1xf32> to vector<2x8x8xf32>
    %124 = arith.mulf %119, %123 : vector<2x8x8xf32>
    %125 = arith.truncf %124 : vector<2x8x8xf32> to vector<2x8x8xbf16>
    %126 = arith.truncf %111 : vector<2x8x8xf32> to vector<2x8x8xbf16>
    "tpu.trace_start"() <{level = 10 : i32, message = "bqk,bkd->bqd"}> : () -> ()
    %cst_37 = arith.constant dense<0.000000e+00> : vector<2x8x8xf32>
    %127 = tpu.matmul %125, %126, %cst_37 {dimension_numbers = #tpu.dot_dimension_numbers<[2], [1], [1], [2], [0, 0, 0, 1, 1, 2], [0], [0]>} : vector<2x8x8xbf16>, vector<2x8x8xbf16>, vector<2x8x8xf32> -> vector<2x8x8xf32>
    "tpu.trace_stop"() : () -> ()
    %128 = vector.extract_strided_slice %9 {offsets = [24, 0], sizes = [8, 32], strides = [1, 1]} : vector<32x32xf32> to vector<8x32xf32>
    %129 = arith.truncf %128 : vector<8x32xf32> to vector<8x32xbf16>
    %130 = vector.shape_cast %127 : vector<2x8x8xf32> to vector<16x8xf32>
    %131 = arith.truncf %130 : vector<16x8xf32> to vector<16x8xbf16>
    %cst_38 = arith.constant dense<0.000000e+00> : vector<16x32xf32>
    %132 = tpu.matmul %131, %129, %cst_38 {dimension_numbers = #tpu.dot_dimension_numbers<[1], [0], [0], [1], [0, 0, 1, 1], [], []>} : vector<16x8xbf16>, vector<8x32xbf16>, vector<16x32xf32> -> vector<16x32xf32>
    %133 = arith.addf %106, %132 : vector<16x32xf32>
    %134 = vector.broadcast %12 : vector<1x32xf32> to vector<16x32xf32>
    %135 = arith.addf %133, %134 : vector<16x32xf32>
    %136 = arith.addf %135, %5 : vector<16x32xf32>
    %cst_39 = arith.constant dense<0.000000e+00> : vector<16xf32>
    %137 = vector.multi_reduction <add>, %136, %cst_39 [1] : vector<16x32xf32> to vector<16xf32>
    %138 = vector.shape_cast %137 : vector<16xf32> to vector<16x1xf32>
    %cst_40 = arith.constant 3.200000e+01 : f32
    %139 = vector.broadcast %cst_40 : f32 to vector<16x1xf32>
    %140 = arith.divf %138, %139 : vector<16x1xf32>
    %141 = vector.broadcast %140 : vector<16x1xf32> to vector<16x32xf32>
    %142 = arith.subf %136, %141 : vector<16x32xf32>
    %143 = arith.mulf %142, %142 : vector<16x32xf32>
    %cst_41 = arith.constant dense<0.000000e+00> : vector<16xf32>
    %144 = vector.multi_reduction <add>, %143, %cst_41 [1] : vector<16x32xf32> to vector<16xf32>
    %145 = vector.shape_cast %144 : vector<16xf32> to vector<16x1xf32>
    %cst_42 = arith.constant 3.200000e+01 : f32
    %146 = vector.broadcast %cst_42 : f32 to vector<16x1xf32>
    %147 = arith.divf %145, %146 : vector<16x1xf32>
    %148 = vector.broadcast %140 : vector<16x1xf32> to vector<16x32xf32>
    %149 = arith.subf %136, %148 : vector<16x32xf32>
    %cst_43 = arith.constant 9.99999996E-13 : f32
    %150 = vector.broadcast %cst_43 : f32 to vector<16x1xf32>
    %151 = arith.addf %147, %150 : vector<16x1xf32>
    %152 = math.rsqrt %151 : vector<16x1xf32>
    %153 = vector.broadcast %152 : vector<16x1xf32> to vector<16x32xf32>
    %154 = arith.mulf %149, %153 : vector<16x32xf32>
    %155 = vector.broadcast %13 : vector<1x32xf32> to vector<16x32xf32>
    %156 = arith.mulf %154, %155 : vector<16x32xf32>
    %157 = vector.broadcast %14 : vector<1x32xf32> to vector<16x32xf32>
    %158 = arith.addf %156, %157 : vector<16x32xf32>
    %159 = arith.truncf %158 : vector<16x32xf32> to vector<16x32xbf16>
    %c0_44 = arith.constant 0 : index
    %c0_45 = arith.constant 0 : index
    %c0_46 = arith.constant 0 : index
    %160 = vector.load %arg3[%c0_44, %c0_45, %c0_46] : memref<2x32x64xbf16, #tpu.memory_space<vmem>>, vector<1x32x64xbf16>
    %161 = vector.shape_cast %160 : vector<1x32x64xbf16> to vector<32x64xbf16>
    %cst_47 = arith.constant dense<0.000000e+00> : vector<16x64xf32>
    %162 = tpu.matmul %159, %161, %cst_47 {dimension_numbers = #tpu.dot_dimension_numbers<[1], [0], [0], [1], [0, 0, 1, 1], [], []>} : vector<16x32xbf16>, vector<32x64xbf16>, vector<16x64xf32> -> vector<16x64xf32>
    %c0_48 = arith.constant 0 : index
    %c0_49 = arith.constant 0 : index
    %c0_50 = arith.constant 0 : index
    %163 = vector.load %arg6[%c0_48, %c0_49, %c0_50] : memref<2x1x64xf32, #tpu.memory_space<vmem>>, vector<1x1x64xf32>
    %164 = vector.shape_cast %163 : vector<1x1x64xf32> to vector<1x64xf32>
    %165 = vector.broadcast %164 : vector<1x64xf32> to vector<16x64xf32>
    %166 = arith.addf %162, %165 : vector<16x64xf32>
    %cst_51 = arith.constant 5.000000e-01 : f32
    %167 = vector.broadcast %cst_51 : f32 to vector<16x64xf32>
    %168 = arith.mulf %167, %166 : vector<16x64xf32>
    %169 = vector.broadcast %3 : f32 to vector<16x64xf32>
    %170 = arith.mulf %166, %169 : vector<16x64xf32>
    %171 = math.erf %170 : vector<16x64xf32>
    %cst_52 = arith.constant 1.000000e+00 : f32
    %172 = vector.broadcast %cst_52 : f32 to vector<16x64xf32>
    %173 = arith.addf %172, %171 : vector<16x64xf32>
    %174 = arith.mulf %168, %173 : vector<16x64xf32>
    %175 = arith.truncf %174 : vector<16x64xf32> to vector<16x64xbf16>
    %c0_53 = arith.constant 0 : index
    %c0_54 = arith.constant 0 : index
    %c0_55 = arith.constant 0 : index
    %176 = vector.load %arg4[%c0_53, %c0_54, %c0_55] : memref<2x64x32xbf16, #tpu.memory_space<vmem>>, vector<1x64x32xbf16>
    %177 = vector.shape_cast %176 : vector<1x64x32xbf16> to vector<64x32xbf16>
    %cst_56 = arith.constant dense<0.000000e+00> : vector<16x32xf32>
    %178 = tpu.matmul %175, %177, %cst_56 {dimension_numbers = #tpu.dot_dimension_numbers<[1], [0], [0], [1], [0, 0, 1, 1], [], []>} : vector<16x64xbf16>, vector<64x32xbf16>, vector<16x32xf32> -> vector<16x32xf32>
    %179 = vector.broadcast %15 : vector<1x32xf32> to vector<16x32xf32>
    %180 = arith.addf %178, %179 : vector<16x32xf32>
    %181 = arith.addf %180, %158 : vector<16x32xf32>
    %cst_57 = arith.constant dense<0.000000e+00> : vector<16xf32>
    %182 = vector.multi_reduction <add>, %181, %cst_57 [1] : vector<16x32xf32> to vector<16xf32>
    %183 = vector.shape_cast %182 : vector<16xf32> to vector<16x1xf32>
    %cst_58 = arith.constant 3.200000e+01 : f32
    %184 = vector.broadcast %cst_58 : f32 to vector<16x1xf32>
    %185 = arith.divf %183, %184 : vector<16x1xf32>
    %186 = vector.broadcast %185 : vector<16x1xf32> to vector<16x32xf32>
    %187 = arith.subf %181, %186 : vector<16x32xf32>
    %188 = arith.mulf %187, %187 : vector<16x32xf32>
    %cst_59 = arith.constant dense<0.000000e+00> : vector<16xf32>
    %189 = vector.multi_reduction <add>, %188, %cst_59 [1] : vector<16x32xf32> to vector<16xf32>
    %190 = vector.shape_cast %189 : vector<16xf32> to vector<16x1xf32>
    %cst_60 = arith.constant 3.200000e+01 : f32
    %191 = vector.broadcast %cst_60 : f32 to vector<16x1xf32>
    %192 = arith.divf %190, %191 : vector<16x1xf32>
    %193 = vector.broadcast %185 : vector<16x1xf32> to vector<16x32xf32>
    %194 = arith.subf %181, %193 : vector<16x32xf32>
    %cst_61 = arith.constant 9.99999996E-13 : f32
    %195 = vector.broadcast %cst_61 : f32 to vector<16x1xf32>
    %196 = arith.addf %192, %195 : vector<16x1xf32>
    %197 = math.rsqrt %196 : vector<16x1xf32>
    %198 = vector.broadcast %197 : vector<16x1xf32> to vector<16x32xf32>
    %199 = arith.mulf %194, %198 : vector<16x32xf32>
    %200 = vector.broadcast %16 : vector<1x32xf32> to vector<16x32xf32>
    %201 = arith.mulf %199, %200 : vector<16x32xf32>
    %202 = vector.broadcast %17 : vector<1x32xf32> to vector<16x32xf32>
    %203 = arith.addf %201, %202 : vector<16x32xf32>
    %c1 = arith.constant 1 : index
    %c0_62 = arith.constant 0 : index
    %c0_63 = arith.constant 0 : index
    %204 = vector.load %arg1[%c1, %c0_62, %c0_63] : memref<2x32x96xbf16, #tpu.memory_space<vmem>>, vector<1x32x96xbf16>
    %205 = vector.shape_cast %204 : vector<1x32x96xbf16> to vector<32x96xbf16>
    %c1_64 = arith.constant 1 : index
    %c0_65 = arith.constant 0 : index
    %c0_66 = arith.constant 0 : index
    %206 = vector.load %arg2[%c1_64, %c0_65, %c0_66] : memref<2x32x32xf32, #tpu.memory_space<vmem>>, vector<1x32x32xf32>
    %207 = vector.shape_cast %206 : vector<1x32x32xf32> to vector<32x32xf32>
    %c1_67 = arith.constant 1 : index
    %c0_68 = arith.constant 0 : index
    %c0_69 = arith.constant 0 : index
    %208 = vector.load %arg7[%c1_67, %c0_68, %c0_69] : memref<2x6x32xf32, #tpu.memory_space<vmem>>, vector<1x6x32xf32>
    %209 = vector.shape_cast %208 : vector<1x6x32xf32> to vector<6x32xf32>
    %210 = vector.extract_strided_slice %209 {offsets = [0, 0], sizes = [1, 32], strides = [1, 1]} : vector<6x32xf32> to vector<1x32xf32>
    %211 = vector.extract_strided_slice %209 {offsets = [1, 0], sizes = [1, 32], strides = [1, 1]} : vector<6x32xf32> to vector<1x32xf32>
    %212 = vector.extract_strided_slice %209 {offsets = [2, 0], sizes = [1, 32], strides = [1, 1]} : vector<6x32xf32> to vector<1x32xf32>
    %213 = vector.extract_strided_slice %209 {offsets = [3, 0], sizes = [1, 32], strides = [1, 1]} : vector<6x32xf32> to vector<1x32xf32>
    %214 = vector.extract_strided_slice %209 {offsets = [4, 0], sizes = [1, 32], strides = [1, 1]} : vector<6x32xf32> to vector<1x32xf32>
    %215 = vector.extract_strided_slice %209 {offsets = [5, 0], sizes = [1, 32], strides = [1, 1]} : vector<6x32xf32> to vector<1x32xf32>
    %216 = arith.truncf %203 : vector<16x32xf32> to vector<16x32xbf16>
    %cst_70 = arith.constant dense<0.000000e+00> : vector<16x96xf32>
    %217 = tpu.matmul %216, %205, %cst_70 {dimension_numbers = #tpu.dot_dimension_numbers<[1], [0], [0], [1], [0, 0, 1, 1], [], []>} : vector<16x32xbf16>, vector<32x96xbf16>, vector<16x96xf32> -> vector<16x96xf32>
    %c1_71 = arith.constant 1 : index
    %c0_72 = arith.constant 0 : index
    %c0_73 = arith.constant 0 : index
    %218 = vector.load %arg5[%c1_71, %c0_72, %c0_73] : memref<2x1x96xf32, #tpu.memory_space<vmem>>, vector<1x1x96xf32>
    %219 = vector.shape_cast %218 : vector<1x1x96xf32> to vector<1x96xf32>
    %220 = vector.broadcast %219 : vector<1x96xf32> to vector<16x96xf32>
    %221 = arith.addf %217, %220 : vector<16x96xf32>
    %222 = vector.shape_cast %221 : vector<16x96xf32> to vector<2x8x96xf32>
    %cst_74 = arith.constant 0.000000e+00 : f32
    %223 = vector.broadcast %cst_74 : f32 to vector<16x32xf32>
    %224 = vector.extract_strided_slice %222 {offsets = [0, 0, 0], sizes = [2, 8, 8], strides = [1, 1, 1]} : vector<2x8x96xf32> to vector<2x8x8xf32>
    %225 = vector.broadcast %1 : f32 to vector<2x8x8xf32>
    %226 = arith.mulf %224, %225 : vector<2x8x8xf32>
    %227 = vector.extract_strided_slice %222 {offsets = [0, 0, 32], sizes = [2, 8, 8], strides = [1, 1, 1]} : vector<2x8x96xf32> to vector<2x8x8xf32>
    %228 = vector.extract_strided_slice %222 {offsets = [0, 0, 64], sizes = [2, 8, 8], strides = [1, 1, 1]} : vector<2x8x96xf32> to vector<2x8x8xf32>
    %229 = arith.truncf %226 : vector<2x8x8xf32> to vector<2x8x8xbf16>
    %230 = arith.truncf %227 : vector<2x8x8xf32> to vector<2x8x8xbf16>
    "tpu.trace_start"() <{level = 10 : i32, message = "bqd,bkd->bqk"}> : () -> ()
    %cst_75 = arith.constant dense<0.000000e+00> : vector<2x8x8xf32>
    %231 = tpu.matmul %229, %230, %cst_75 {dimension_numbers = #tpu.dot_dimension_numbers<[2], [2], [1], [1], [0, 0, 0, 1, 1, 1], [0], [0]>} : vector<2x8x8xbf16>, vector<2x8x8xbf16>, vector<2x8x8xf32> -> vector<2x8x8xf32>
    "tpu.trace_stop"() : () -> ()
    %cst_76 = arith.constant dense<0xFF800000> : vector<2x8xf32>
    %232 = vector.multi_reduction <maximumf>, %231, %cst_76 [2] : vector<2x8x8xf32> to vector<2x8xf32>
    %233 = vector.shape_cast %232 : vector<2x8xf32> to vector<2x8x1xf32>
    %234 = vector.broadcast %233 : vector<2x8x1xf32> to vector<2x8x8xf32>
    %235 = arith.subf %231, %234 : vector<2x8x8xf32>
    %236 = math.exp %235 : vector<2x8x8xf32>
    %cst_77 = arith.constant dense<0.000000e+00> : vector<2x8xf32>
    %237 = vector.multi_reduction <add>, %236, %cst_77 [2] : vector<2x8x8xf32> to vector<2x8xf32>
    %238 = vector.shape_cast %237 : vector<2x8xf32> to vector<2x8x1xf32>
    %239 = tpu.reciprocal %238 {approx = true} : vector<2x8x1xf32> -> vector<2x8x1xf32>
    %240 = vector.broadcast %239 : vector<2x8x1xf32> to vector<2x8x8xf32>
    %241 = arith.mulf %236, %240 : vector<2x8x8xf32>
    %242 = arith.truncf %241 : vector<2x8x8xf32> to vector<2x8x8xbf16>
    %243 = arith.truncf %228 : vector<2x8x8xf32> to vector<2x8x8xbf16>
    "tpu.trace_start"() <{level = 10 : i32, message = "bqk,bkd->bqd"}> : () -> ()
    %cst_78 = arith.constant dense<0.000000e+00> : vector<2x8x8xf32>
    %244 = tpu.matmul %242, %243, %cst_78 {dimension_numbers = #tpu.dot_dimension_numbers<[2], [1], [1], [2], [0, 0, 0, 1, 1, 2], [0], [0]>} : vector<2x8x8xbf16>, vector<2x8x8xbf16>, vector<2x8x8xf32> -> vector<2x8x8xf32>
    "tpu.trace_stop"() : () -> ()
    %245 = vector.extract_strided_slice %207 {offsets = [0, 0], sizes = [8, 32], strides = [1, 1]} : vector<32x32xf32> to vector<8x32xf32>
    %246 = arith.truncf %245 : vector<8x32xf32> to vector<8x32xbf16>
    %247 = vector.shape_cast %244 : vector<2x8x8xf32> to vector<16x8xf32>
    %248 = arith.truncf %247 : vector<16x8xf32> to vector<16x8xbf16>
    %cst_79 = arith.constant dense<0.000000e+00> : vector<16x32xf32>
    %249 = tpu.matmul %248, %246, %cst_79 {dimension_numbers = #tpu.dot_dimension_numbers<[1], [0], [0], [1], [0, 0, 1, 1], [], []>} : vector<16x8xbf16>, vector<8x32xbf16>, vector<16x32xf32> -> vector<16x32xf32>
    %250 = arith.addf %223, %249 : vector<16x32xf32>
    %251 = vector.extract_strided_slice %222 {offsets = [0, 0, 8], sizes = [2, 8, 8], strides = [1, 1, 1]} : vector<2x8x96xf32> to vector<2x8x8xf32>
    %252 = vector.broadcast %1 : f32 to vector<2x8x8xf32>
    %253 = arith.mulf %251, %252 : vector<2x8x8xf32>
    %254 = vector.extract_strided_slice %222 {offsets = [0, 0, 40], sizes = [2, 8, 8], strides = [1, 1, 1]} : vector<2x8x96xf32> to vector<2x8x8xf32>
    %255 = vector.extract_strided_slice %222 {offsets = [0, 0, 72], sizes = [2, 8, 8], strides = [1, 1, 1]} : vector<2x8x96xf32> to vector<2x8x8xf32>
    %256 = arith.truncf %253 : vector<2x8x8xf32> to vector<2x8x8xbf16>
    %257 = arith.truncf %254 : vector<2x8x8xf32> to vector<2x8x8xbf16>
    "tpu.trace_start"() <{level = 10 : i32, message = "bqd,bkd->bqk"}> : () -> ()
    %cst_80 = arith.constant dense<0.000000e+00> : vector<2x8x8xf32>
    %258 = tpu.matmul %256, %257, %cst_80 {dimension_numbers = #tpu.dot_dimension_numbers<[2], [2], [1], [1], [0, 0, 0, 1, 1, 1], [0], [0]>} : vector<2x8x8xbf16>, vector<2x8x8xbf16>, vector<2x8x8xf32> -> vector<2x8x8xf32>
    "tpu.trace_stop"() : () -> ()
    %cst_81 = arith.constant dense<0xFF800000> : vector<2x8xf32>
    %259 = vector.multi_reduction <maximumf>, %258, %cst_81 [2] : vector<2x8x8xf32> to vector<2x8xf32>
    %260 = vector.shape_cast %259 : vector<2x8xf32> to vector<2x8x1xf32>
    %261 = vector.broadcast %260 : vector<2x8x1xf32> to vector<2x8x8xf32>
    %262 = arith.subf %258, %261 : vector<2x8x8xf32>
    %263 = math.exp %262 : vector<2x8x8xf32>
    %cst_82 = arith.constant dense<0.000000e+00> : vector<2x8xf32>
    %264 = vector.multi_reduction <add>, %263, %cst_82 [2] : vector<2x8x8xf32> to vector<2x8xf32>
    %265 = vector.shape_cast %264 : vector<2x8xf32> to vector<2x8x1xf32>
    %266 = tpu.reciprocal %265 {approx = true} : vector<2x8x1xf32> -> vector<2x8x1xf32>
    %267 = vector.broadcast %266 : vector<2x8x1xf32> to vector<2x8x8xf32>
    %268 = arith.mulf %263, %267 : vector<2x8x8xf32>
    %269 = arith.truncf %268 : vector<2x8x8xf32> to vector<2x8x8xbf16>
    %270 = arith.truncf %255 : vector<2x8x8xf32> to vector<2x8x8xbf16>
    "tpu.trace_start"() <{level = 10 : i32, message = "bqk,bkd->bqd"}> : () -> ()
    %cst_83 = arith.constant dense<0.000000e+00> : vector<2x8x8xf32>
    %271 = tpu.matmul %269, %270, %cst_83 {dimension_numbers = #tpu.dot_dimension_numbers<[2], [1], [1], [2], [0, 0, 0, 1, 1, 2], [0], [0]>} : vector<2x8x8xbf16>, vector<2x8x8xbf16>, vector<2x8x8xf32> -> vector<2x8x8xf32>
    "tpu.trace_stop"() : () -> ()
    %272 = vector.extract_strided_slice %207 {offsets = [8, 0], sizes = [8, 32], strides = [1, 1]} : vector<32x32xf32> to vector<8x32xf32>
    %273 = arith.truncf %272 : vector<8x32xf32> to vector<8x32xbf16>
    %274 = vector.shape_cast %271 : vector<2x8x8xf32> to vector<16x8xf32>
    %275 = arith.truncf %274 : vector<16x8xf32> to vector<16x8xbf16>
    %cst_84 = arith.constant dense<0.000000e+00> : vector<16x32xf32>
    %276 = tpu.matmul %275, %273, %cst_84 {dimension_numbers = #tpu.dot_dimension_numbers<[1], [0], [0], [1], [0, 0, 1, 1], [], []>} : vector<16x8xbf16>, vector<8x32xbf16>, vector<16x32xf32> -> vector<16x32xf32>
    %277 = arith.addf %250, %276 : vector<16x32xf32>
    %278 = vector.extract_strided_slice %222 {offsets = [0, 0, 16], sizes = [2, 8, 8], strides = [1, 1, 1]} : vector<2x8x96xf32> to vector<2x8x8xf32>
    %279 = vector.broadcast %1 : f32 to vector<2x8x8xf32>
    %280 = arith.mulf %278, %279 : vector<2x8x8xf32>
    %281 = vector.extract_strided_slice %222 {offsets = [0, 0, 48], sizes = [2, 8, 8], strides = [1, 1, 1]} : vector<2x8x96xf32> to vector<2x8x8xf32>
    %282 = vector.extract_strided_slice %222 {offsets = [0, 0, 80], sizes = [2, 8, 8], strides = [1, 1, 1]} : vector<2x8x96xf32> to vector<2x8x8xf32>
    %283 = arith.truncf %280 : vector<2x8x8xf32> to vector<2x8x8xbf16>
    %284 = arith.truncf %281 : vector<2x8x8xf32> to vector<2x8x8xbf16>
    "tpu.trace_start"() <{level = 10 : i32, message = "bqd,bkd->bqk"}> : () -> ()
    %cst_85 = arith.constant dense<0.000000e+00> : vector<2x8x8xf32>
    %285 = tpu.matmul %283, %284, %cst_85 {dimension_numbers = #tpu.dot_dimension_numbers<[2], [2], [1], [1], [0, 0, 0, 1, 1, 1], [0], [0]>} : vector<2x8x8xbf16>, vector<2x8x8xbf16>, vector<2x8x8xf32> -> vector<2x8x8xf32>
    "tpu.trace_stop"() : () -> ()
    %cst_86 = arith.constant dense<0xFF800000> : vector<2x8xf32>
    %286 = vector.multi_reduction <maximumf>, %285, %cst_86 [2] : vector<2x8x8xf32> to vector<2x8xf32>
    %287 = vector.shape_cast %286 : vector<2x8xf32> to vector<2x8x1xf32>
    %288 = vector.broadcast %287 : vector<2x8x1xf32> to vector<2x8x8xf32>
    %289 = arith.subf %285, %288 : vector<2x8x8xf32>
    %290 = math.exp %289 : vector<2x8x8xf32>
    %cst_87 = arith.constant dense<0.000000e+00> : vector<2x8xf32>
    %291 = vector.multi_reduction <add>, %290, %cst_87 [2] : vector<2x8x8xf32> to vector<2x8xf32>
    %292 = vector.shape_cast %291 : vector<2x8xf32> to vector<2x8x1xf32>
    %293 = tpu.reciprocal %292 {approx = true} : vector<2x8x1xf32> -> vector<2x8x1xf32>
    %294 = vector.broadcast %293 : vector<2x8x1xf32> to vector<2x8x8xf32>
    %295 = arith.mulf %290, %294 : vector<2x8x8xf32>
    %296 = arith.truncf %295 : vector<2x8x8xf32> to vector<2x8x8xbf16>
    %297 = arith.truncf %282 : vector<2x8x8xf32> to vector<2x8x8xbf16>
    "tpu.trace_start"() <{level = 10 : i32, message = "bqk,bkd->bqd"}> : () -> ()
    %cst_88 = arith.constant dense<0.000000e+00> : vector<2x8x8xf32>
    %298 = tpu.matmul %296, %297, %cst_88 {dimension_numbers = #tpu.dot_dimension_numbers<[2], [1], [1], [2], [0, 0, 0, 1, 1, 2], [0], [0]>} : vector<2x8x8xbf16>, vector<2x8x8xbf16>, vector<2x8x8xf32> -> vector<2x8x8xf32>
    "tpu.trace_stop"() : () -> ()
    %299 = vector.extract_strided_slice %207 {offsets = [16, 0], sizes = [8, 32], strides = [1, 1]} : vector<32x32xf32> to vector<8x32xf32>
    %300 = arith.truncf %299 : vector<8x32xf32> to vector<8x32xbf16>
    %301 = vector.shape_cast %298 : vector<2x8x8xf32> to vector<16x8xf32>
    %302 = arith.truncf %301 : vector<16x8xf32> to vector<16x8xbf16>
    %cst_89 = arith.constant dense<0.000000e+00> : vector<16x32xf32>
    %303 = tpu.matmul %302, %300, %cst_89 {dimension_numbers = #tpu.dot_dimension_numbers<[1], [0], [0], [1], [0, 0, 1, 1], [], []>} : vector<16x8xbf16>, vector<8x32xbf16>, vector<16x32xf32> -> vector<16x32xf32>
    %304 = arith.addf %277, %303 : vector<16x32xf32>
    %305 = vector.extract_strided_slice %222 {offsets = [0, 0, 24], sizes = [2, 8, 8], strides = [1, 1, 1]} : vector<2x8x96xf32> to vector<2x8x8xf32>
    %306 = vector.broadcast %1 : f32 to vector<2x8x8xf32>
    %307 = arith.mulf %305, %306 : vector<2x8x8xf32>
    %308 = vector.extract_strided_slice %222 {offsets = [0, 0, 56], sizes = [2, 8, 8], strides = [1, 1, 1]} : vector<2x8x96xf32> to vector<2x8x8xf32>
    %309 = vector.extract_strided_slice %222 {offsets = [0, 0, 88], sizes = [2, 8, 8], strides = [1, 1, 1]} : vector<2x8x96xf32> to vector<2x8x8xf32>
    %310 = arith.truncf %307 : vector<2x8x8xf32> to vector<2x8x8xbf16>
    %311 = arith.truncf %308 : vector<2x8x8xf32> to vector<2x8x8xbf16>
    "tpu.trace_start"() <{level = 10 : i32, message = "bqd,bkd->bqk"}> : () -> ()
    %cst_90 = arith.constant dense<0.000000e+00> : vector<2x8x8xf32>
    %312 = tpu.matmul %310, %311, %cst_90 {dimension_numbers = #tpu.dot_dimension_numbers<[2], [2], [1], [1], [0, 0, 0, 1, 1, 1], [0], [0]>} : vector<2x8x8xbf16>, vector<2x8x8xbf16>, vector<2x8x8xf32> -> vector<2x8x8xf32>
    "tpu.trace_stop"() : () -> ()
    %cst_91 = arith.constant dense<0xFF800000> : vector<2x8xf32>
    %313 = vector.multi_reduction <maximumf>, %312, %cst_91 [2] : vector<2x8x8xf32> to vector<2x8xf32>
    %314 = vector.shape_cast %313 : vector<2x8xf32> to vector<2x8x1xf32>
    %315 = vector.broadcast %314 : vector<2x8x1xf32> to vector<2x8x8xf32>
    %316 = arith.subf %312, %315 : vector<2x8x8xf32>
    %317 = math.exp %316 : vector<2x8x8xf32>
    %cst_92 = arith.constant dense<0.000000e+00> : vector<2x8xf32>
    %318 = vector.multi_reduction <add>, %317, %cst_92 [2] : vector<2x8x8xf32> to vector<2x8xf32>
    %319 = vector.shape_cast %318 : vector<2x8xf32> to vector<2x8x1xf32>
    %320 = tpu.reciprocal %319 {approx = true} : vector<2x8x1xf32> -> vector<2x8x1xf32>
    %321 = vector.broadcast %320 : vector<2x8x1xf32> to vector<2x8x8xf32>
    %322 = arith.mulf %317, %321 : vector<2x8x8xf32>
    %323 = arith.truncf %322 : vector<2x8x8xf32> to vector<2x8x8xbf16>
    %324 = arith.truncf %309 : vector<2x8x8xf32> to vector<2x8x8xbf16>
    "tpu.trace_start"() <{level = 10 : i32, message = "bqk,bkd->bqd"}> : () -> ()
    %cst_93 = arith.constant dense<0.000000e+00> : vector<2x8x8xf32>
    %325 = tpu.matmul %323, %324, %cst_93 {dimension_numbers = #tpu.dot_dimension_numbers<[2], [1], [1], [2], [0, 0, 0, 1, 1, 2], [0], [0]>} : vector<2x8x8xbf16>, vector<2x8x8xbf16>, vector<2x8x8xf32> -> vector<2x8x8xf32>
    "tpu.trace_stop"() : () -> ()
    %326 = vector.extract_strided_slice %207 {offsets = [24, 0], sizes = [8, 32], strides = [1, 1]} : vector<32x32xf32> to vector<8x32xf32>
    %327 = arith.truncf %326 : vector<8x32xf32> to vector<8x32xbf16>
    %328 = vector.shape_cast %325 : vector<2x8x8xf32> to vector<16x8xf32>
    %329 = arith.truncf %328 : vector<16x8xf32> to vector<16x8xbf16>
    %cst_94 = arith.constant dense<0.000000e+00> : vector<16x32xf32>
    %330 = tpu.matmul %329, %327, %cst_94 {dimension_numbers = #tpu.dot_dimension_numbers<[1], [0], [0], [1], [0, 0, 1, 1], [], []>} : vector<16x8xbf16>, vector<8x32xbf16>, vector<16x32xf32> -> vector<16x32xf32>
    %331 = arith.addf %304, %330 : vector<16x32xf32>
    %332 = vector.broadcast %210 : vector<1x32xf32> to vector<16x32xf32>
    %333 = arith.addf %331, %332 : vector<16x32xf32>
    %334 = arith.addf %333, %203 : vector<16x32xf32>
    %cst_95 = arith.constant dense<0.000000e+00> : vector<16xf32>
    %335 = vector.multi_reduction <add>, %334, %cst_95 [1] : vector<16x32xf32> to vector<16xf32>
    %336 = vector.shape_cast %335 : vector<16xf32> to vector<16x1xf32>
    %cst_96 = arith.constant 3.200000e+01 : f32
    %337 = vector.broadcast %cst_96 : f32 to vector<16x1xf32>
    %338 = arith.divf %336, %337 : vector<16x1xf32>
    %339 = vector.broadcast %338 : vector<16x1xf32> to vector<16x32xf32>
    %340 = arith.subf %334, %339 : vector<16x32xf32>
    %341 = arith.mulf %340, %340 : vector<16x32xf32>
    %cst_97 = arith.constant dense<0.000000e+00> : vector<16xf32>
    %342 = vector.multi_reduction <add>, %341, %cst_97 [1] : vector<16x32xf32> to vector<16xf32>
    %343 = vector.shape_cast %342 : vector<16xf32> to vector<16x1xf32>
    %cst_98 = arith.constant 3.200000e+01 : f32
    %344 = vector.broadcast %cst_98 : f32 to vector<16x1xf32>
    %345 = arith.divf %343, %344 : vector<16x1xf32>
    %346 = vector.broadcast %338 : vector<16x1xf32> to vector<16x32xf32>
    %347 = arith.subf %334, %346 : vector<16x32xf32>
    %cst_99 = arith.constant 9.99999996E-13 : f32
    %348 = vector.broadcast %cst_99 : f32 to vector<16x1xf32>
    %349 = arith.addf %345, %348 : vector<16x1xf32>
    %350 = math.rsqrt %349 : vector<16x1xf32>
    %351 = vector.broadcast %350 : vector<16x1xf32> to vector<16x32xf32>
    %352 = arith.mulf %347, %351 : vector<16x32xf32>
    %353 = vector.broadcast %211 : vector<1x32xf32> to vector<16x32xf32>
    %354 = arith.mulf %352, %353 : vector<16x32xf32>
    %355 = vector.broadcast %212 : vector<1x32xf32> to vector<16x32xf32>
    %356 = arith.addf %354, %355 : vector<16x32xf32>
    %357 = arith.truncf %356 : vector<16x32xf32> to vector<16x32xbf16>
    %c1_100 = arith.constant 1 : index
    %c0_101 = arith.constant 0 : index
    %c0_102 = arith.constant 0 : index
    %358 = vector.load %arg3[%c1_100, %c0_101, %c0_102] : memref<2x32x64xbf16, #tpu.memory_space<vmem>>, vector<1x32x64xbf16>
    %359 = vector.shape_cast %358 : vector<1x32x64xbf16> to vector<32x64xbf16>
    %cst_103 = arith.constant dense<0.000000e+00> : vector<16x64xf32>
    %360 = tpu.matmul %357, %359, %cst_103 {dimension_numbers = #tpu.dot_dimension_numbers<[1], [0], [0], [1], [0, 0, 1, 1], [], []>} : vector<16x32xbf16>, vector<32x64xbf16>, vector<16x64xf32> -> vector<16x64xf32>
    %c1_104 = arith.constant 1 : index
    %c0_105 = arith.constant 0 : index
    %c0_106 = arith.constant 0 : index
    %361 = vector.load %arg6[%c1_104, %c0_105, %c0_106] : memref<2x1x64xf32, #tpu.memory_space<vmem>>, vector<1x1x64xf32>
    %362 = vector.shape_cast %361 : vector<1x1x64xf32> to vector<1x64xf32>
    %363 = vector.broadcast %362 : vector<1x64xf32> to vector<16x64xf32>
    %364 = arith.addf %360, %363 : vector<16x64xf32>
    %cst_107 = arith.constant 5.000000e-01 : f32
    %365 = vector.broadcast %cst_107 : f32 to vector<16x64xf32>
    %366 = arith.mulf %365, %364 : vector<16x64xf32>
    %367 = vector.broadcast %3 : f32 to vector<16x64xf32>
    %368 = arith.mulf %364, %367 : vector<16x64xf32>
    %369 = math.erf %368 : vector<16x64xf32>
    %cst_108 = arith.constant 1.000000e+00 : f32
    %370 = vector.broadcast %cst_108 : f32 to vector<16x64xf32>
    %371 = arith.addf %370, %369 : vector<16x64xf32>
    %372 = arith.mulf %366, %371 : vector<16x64xf32>
    %373 = arith.truncf %372 : vector<16x64xf32> to vector<16x64xbf16>
    %c1_109 = arith.constant 1 : index
    %c0_110 = arith.constant 0 : index
    %c0_111 = arith.constant 0 : index
    %374 = vector.load %arg4[%c1_109, %c0_110, %c0_111] : memref<2x64x32xbf16, #tpu.memory_space<vmem>>, vector<1x64x32xbf16>
    %375 = vector.shape_cast %374 : vector<1x64x32xbf16> to vector<64x32xbf16>
    %cst_112 = arith.constant dense<0.000000e+00> : vector<16x32xf32>
    %376 = tpu.matmul %373, %375, %cst_112 {dimension_numbers = #tpu.dot_dimension_numbers<[1], [0], [0], [1], [0, 0, 1, 1], [], []>} : vector<16x64xbf16>, vector<64x32xbf16>, vector<16x32xf32> -> vector<16x32xf32>
    %377 = vector.broadcast %213 : vector<1x32xf32> to vector<16x32xf32>
    %378 = arith.addf %376, %377 : vector<16x32xf32>
    %379 = arith.addf %378, %356 : vector<16x32xf32>
    %cst_113 = arith.constant dense<0.000000e+00> : vector<16xf32>
    %380 = vector.multi_reduction <add>, %379, %cst_113 [1] : vector<16x32xf32> to vector<16xf32>
    %381 = vector.shape_cast %380 : vector<16xf32> to vector<16x1xf32>
    %cst_114 = arith.constant 3.200000e+01 : f32
    %382 = vector.broadcast %cst_114 : f32 to vector<16x1xf32>
    %383 = arith.divf %381, %382 : vector<16x1xf32>
    %384 = vector.broadcast %383 : vector<16x1xf32> to vector<16x32xf32>
    %385 = arith.subf %379, %384 : vector<16x32xf32>
    %386 = arith.mulf %385, %385 : vector<16x32xf32>
    %cst_115 = arith.constant dense<0.000000e+00> : vector<16xf32>
    %387 = vector.multi_reduction <add>, %386, %cst_115 [1] : vector<16x32xf32> to vector<16xf32>
    %388 = vector.shape_cast %387 : vector<16xf32> to vector<16x1xf32>
    %cst_116 = arith.constant 3.200000e+01 : f32
    %389 = vector.broadcast %cst_116 : f32 to vector<16x1xf32>
    %390 = arith.divf %388, %389 : vector<16x1xf32>
    %391 = vector.broadcast %383 : vector<16x1xf32> to vector<16x32xf32>
    %392 = arith.subf %379, %391 : vector<16x32xf32>
    %cst_117 = arith.constant 9.99999996E-13 : f32
    %393 = vector.broadcast %cst_117 : f32 to vector<16x1xf32>
    %394 = arith.addf %390, %393 : vector<16x1xf32>
    %395 = math.rsqrt %394 : vector<16x1xf32>
    %396 = vector.broadcast %395 : vector<16x1xf32> to vector<16x32xf32>
    %397 = arith.mulf %392, %396 : vector<16x32xf32>
    %398 = vector.broadcast %214 : vector<1x32xf32> to vector<16x32xf32>
    %399 = arith.mulf %397, %398 : vector<16x32xf32>
    %400 = vector.broadcast %215 : vector<1x32xf32> to vector<16x32xf32>
    %401 = arith.addf %399, %400 : vector<16x32xf32>
    %402 = arith.truncf %401 : vector<16x32xf32> to vector<16x32xbf16>
    %c0_118 = arith.constant 0 : index
    %c0_119 = arith.constant 0 : index
    %403 = vector.load %arg8[%c0_118, %c0_119] : memref<32x128xbf16, #tpu.memory_space<vmem>>, vector<32x128xbf16>
    %cst_120 = arith.constant dense<0.000000e+00> : vector<16x128xf32>
    %404 = tpu.matmul %402, %403, %cst_120 {dimension_numbers = #tpu.dot_dimension_numbers<[1], [0], [0], [1], [0, 0, 1, 1], [], []>} : vector<16x32xbf16>, vector<32x128xbf16>, vector<16x128xf32> -> vector<16x128xf32>
    %c0_121 = arith.constant 0 : index
    %c0_122 = arith.constant 0 : index
    %405 = vector.load %arg9[%c0_121, %c0_122] : memref<1x128xf32, #tpu.memory_space<vmem>>, vector<1x128xf32>
    %406 = vector.broadcast %405 : vector<1x128xf32> to vector<16x128xf32>
    %407 = arith.addf %404, %406 : vector<16x128xf32>
    %c0_123 = arith.constant 0 : index
    %c0_124 = arith.constant 0 : index
    %408 = vector.load %arg10[%c0_123, %c0_124] : memref<16x128xf32, #tpu.memory_space<vmem>>, vector<16x128xf32>
    tpu.vector_store %arg10[%c0_123, %c0_124], %407 {strides = array<i32>} : memref<16x128xf32, #tpu.memory_space<vmem>>, vector<16x128xf32>,
    return
  }
}

</mosaic_0001>

<bundles_post_ra>
// kernel: tpu_custom_call.1
= control target key start
LH: loop header
LB: loop body
LE: loop exit
PB: predicated region body
PF: predicated region fallthrough
CT: control target
= control target key end

     0   :  { %15 = vsyncpa [#allocation3], 0  ;;  %s4359_s0 = inlined_call_operand.hbm [shape: f32[2,8,32], index: 0, kind: input, shape index: {}]   ;;  %s4360_s1 = inlined_call_operand.vmem [shape: bf16[2,32,96], index: 1, kind: input, shape index: {}]   ;;  %s4361_s2 = inlined_call_operand.vmem [shape: f32[2,32,32], index: 2, kind: input, shape index: {}]   ;;  %s4362_s3 = inlined_call_operand.vmem [shape: bf16[2,32,64], index: 3, kind: input, shape index: {}]   ;;  %s4363_s4 = inlined_call_operand.vmem [shape: bf16[2,64,32], index: 4, kind: input, shape index: {}]   ;;  %s4364_s5 = inlined_call_operand.vmem [shape: f32[2,1,96], index: 5, kind: input, shape index: {}]   ;;  %s4365_s6 = inlined_call_operand.vmem [shape: f32[2,1,64], index: 6, kind: input, shape index: {}]   ;;  %s4366_s7 = inlined_call_operand.vmem [shape: f32[2,6,32], index: 7, kind: input, shape index: {}]   ;;  %s4367_s8 = inlined_call_operand.hbm [shape: bf16[32,128], index: 8, kind: input, shape index: {}]   ;;  %s4368_s9 = inlined_call_operand.vmem [shape: f32[1,128], index: 9, kind: input, shape index: {}]   ;;  %s4369_s10 = inlined_call_operand.hbm [shape: f32[16,128], index: 10, kind: output, shape index: {}]  }
   0x1   :  { %16 = vsyncpa [#allocation6], 0 }
   0x2   :  { %17 = vsyncpa [#allocation4], 0  ;;  %s3668_s13 = smov [#allocation2]  }
   0x3   :  { %s23_s14 = sshll.u32 %s3668_s13, 4  ;;  %s24_s14 = int_to_ptr.vmem [resolvable:$true] %s23_s14 }
   0x4   :  { %s3610_s15 = scalar_lea.vmem %s24_s14, 256  ;;  %p3615_p1 = scmp.lt.s32.totalorder %s24_s14, %s24_s14 }
   0x5   :  { %p3611_p0 = scmp.ne.s32.totalorder %s24_s14, %s3610_s15  ;;  %p3616_p2 = scmp.lt.s32.totalorder %s3610_s15, %s3610_s15 }
   0x7   :  { %p3617_p3 = por %p3616_p2, %p3615_p1 }
   0x9   :  { %p3618_p4 = pnand %p3617_p3, %p3611_p0 }
   0xb   :  { %3621 = shalt.err (!%p3618_p4)
}
   0xc   :  { %s3669_s16 = smov 128   ;;  %s3670_s17 = smov 8  }
   0xd   :  { %29 = dma.hbm_to_vmem [thread:$0]  %s4359_s0, 256, %s24_s14, [#allocation3], %s3669_s16, %s3669_s16, %s3670_s17  }
   0xe   :  { %s3671_s20 = smov [#allocation5]  }
   0xf   :  { %s49_s21 = sshll.u32 %s3671_s20, 4  ;;  %s50_s21 = int_to_ptr.vmem [resolvable:$true] %s49_s21 }
  0x10   :  { %s3630_s22 = scalar_lea.vmem %s50_s21, 256  ;;  %p3635_p6 = scmp.lt.s32.totalorder %s50_s21, %s50_s21 }
  0x11   :  { %p3631_p5 = scmp.ne.s32.totalorder %s50_s21, %s3630_s22  ;;  %p3636_p7 = scmp.lt.s32.totalorder %s3630_s22, %s3630_s22 }
  0x13   :  { %p3637_p8 = por %p3636_p7, %p3635_p6 }
  0x15   :  { %p3638_p9 = pnand %p3637_p8, %p3631_p5 }
  0x17   :  { %3641 = shalt.err (!%p3638_p9)
}
  0x18   :  { %s3672_s23 = smov 64   ;;  %s3673_s24 = smov 4  }
  0x19   :  { %55 = dma.hbm_to_vmem [thread:$0]  %s4367_s8, 256, %s50_s21, [#allocation6], %s3672_s23, %s3672_s23, %s3673_s24  }
  0x1a   :  { %3662 = dma.done.wait [#allocation3], 256  }
  0x1b   :  { %3663 = vsyncadd [#allocation3], 4294967040 }
  0x1c   :  { %3664 = dma.done.wait [#allocation6], 256  }
  0x1d   :  { %3665 = vsyncadd [#allocation6], 4294967040  ;;  %v3674_v0 = vmov 0.0   ;;  %vm3675_vm0 = vmmov 0   ;;  %v3496_v1 = vld [vmem:[%s4360_s1 + $0x8] sm:$0xff]   ;;  %v3497_v2 = vld [vmem:[%s4360_s1] sm:$0xff]  }
  0x1e   :  { %3173 = vmatprep.subr.bf16.mxu0 %v3674_v0  ;;  %3177 = vmatprep.mubr.msk.bf16.mxu0 %vm3675_vm0, %v3674_v0  ;;  %v3765_v3 = vld [vmem:[#allocation2] sm:$0xff]  ;;  %v3767_v4 = vld [vmem:[#allocation2 + $0x8] sm:$0xff]  ;;  %vm96_vm1 = vcmask 261120   ;;  %s3676_s11 = smov 96   ;;  %vm150_vm2 = vcmask 64512   ;;  %s3677_s12 = smov 88  }
  0x1f   :  { %3181 = vmatprep.subr.bf16.mxu1 %v3674_v0  ;;  %3183 = vmatprep.mubr.msk.bf16.mxu1 %vm3675_vm0, %v3674_v0  ;;  %v76_v5 = vpack.c.bf16 %v3767_v4, %v3765_v3  ;;  %v2975_v6 = vld [vmem:[%s4364_s5] ss:$0 sm:$0xff]  ;;  %vm275_vm3 = vcmask 1043456   ;;  %s3678_s13 = smov 120   ;;  %s3679_s14 = smov 56   ;;  %vm1391_vm4 = vcmask 523264  }
  0x20   :  { %3174 = vmatpush3.bf16.msra.mxu0 %v3496_v1  ;;  %s3680_s15 = smov 112   ;;  %s3681_s18 = smov 80  }
  0x21   :  { %3175 = vmatprep.subr.bf16.mxu0 %v3674_v0  ;;  %s3682_s24 = smov 48   ;;  %s3683_s25 = smov 72  }
  0x22   :  { %s3684_s26 = smov 104   ;;  %s3685_s8 = smov 40  }
  0x23   :  { %s3686_s20 = smov [#allocation7]  }
  0x24   :  { %3176 = vmatpush3.bf16.msra.mxu0 %v3497_v2 }
  0x25   :  { %3187 = vmatprep.subr.bf16.mxu0 %v3674_v0 }
  0x27   :  { %3178 = vmatmul.mubr.msk.bf16.vlgmr.msra.gmra.mxu0 %vm96_vm1, %v76_v5 }
  0x28   :  { %3189 = vmatprep.mubr.msk.bf16.mxu0 %vm3675_vm0, %v3674_v0 }
  0xe7   :  { %v134_v7 = vpop.f32.mrf.mxu0 }
  0xe8   :  { %v135_v8 = vadd.f32 %v2975_v6, %v134_v7 }
  0xe9   :  { %v3179_v9 = vpop.f32.mrf.mxu0 }
  0xea   :  { %v3779_v10 = vpack.c.bf16 %v135_v8, %v135_v8  ;;  %v141_v17 = vmul.f32 0.35355338, %v135_v8 }
  0xeb   :  { %v137_v11 = vpop.f32.mrf.mxu0 }
  0xec   :  { %v138_v12 = vadd.f32 %v2975_v6, %v137_v11  ;;  %148 = vrot.lane.b32.xlu0 %v3779_v10, %s3676_s11  ;;  %v3790_v20 = vpack.c.bf16 %v141_v17, %v141_v17 }
  0xed   :  { %v3180_v13 = vpop.f32.mrf.mxu0 }
  0xee   :  { %v3783_v14 = vpack.c.bf16 %v138_v12, %v138_v12  ;;  %v142_v21 = vmul.f32 0.35355338, %v138_v12 }
  0xf0   :  { %198 = vrot.lane.b32.xlu0 %v3783_v14, %s3676_s11  ;;  %v3797_v22 = vpack.c.bf16 %v142_v21, %v142_v21 }
 0x15e   :  { %v149_v15 = vpop.permute.xlu0 %148 }
 0x15f   :  { %v155_v16 = vsel %vm150_vm2, %v149_v15, 0 }
 0x160   :  { %3182 = vmatpush3.bf16.xpose.msra.mxu1 %v155_v16 }
 0x161   :  { %3193 = vmatprep.subr.bf16.mxu1 %v3674_v0 }
 0x162   :  { %v199_v18 = vpop.permute.xlu0 %198 }
 0x163   :  { %v204_v19 = vsel %vm150_vm2, %v199_v18, 0 }
 0x164   :  { %3188 = vmatpush3.bf16.xpose.msra.mxu0 %v204_v19 }
 0x165   :  { %3199 = vmatprep.subr.bf16.mxu0 %v3674_v0 }
 0x167   :  { %3184 = vmatmul.mubr.msk.bf16.vlgmr.msra.gmra.mxu1 %vm150_vm2, %v3790_v20 }
 0x168   :  { %3195 = vmatprep.mubr.msk.bf16.mxu1 %vm3675_vm0, %v3674_v0 }
 0x16b   :  { %3190 = vmatmul.mubr.msk.bf16.vlgmr.msra.gmra.mxu0 %vm150_vm2, %v3797_v22 }
 0x16c   :  { %3201 = vmatprep.mubr.msk.bf16.mxu0 %vm3675_vm0, %v3674_v0 }
 0x227   :  { %v191_v23 = vpop.f32.mrf.mxu1 }
 0x228   :  { %v246_v24 = vsel %vm150_vm2, %v191_v23, -inf }
 0x229   :  { %247 = vmax.xlane.f32.xlu1 %v246_v24  ;;  %v3185_v25 = vpop.f32.mrf.mxu1 }
 0x22b   :  { %v194_v26 = vpop.f32.mrf.mxu1  ;;  %v240_v27 = vpop.f32.mrf.mxu0 }
 0x22c   :  { %v249_v28 = vsel %vm150_vm2, %v240_v27, -inf }
 0x22d   :  { %v3186_v29 = vpop.f32.mrf.mxu1  ;;  %250 = vmax.xlane.f32.xlu1 %v249_v28  ;;  %v3191_v30 = vpop.f32.mrf.mxu0 }
 0x22f   :  { %v243_v31 = vpop.f32.mrf.mxu0 }
 0x231   :  { %v3192_v32 = vpop.f32.mrf.mxu0 }
 0x23e   :  { %270 = vrot.lane.b32.xlu1 %v3779_v10, %s3672_s23 }
 0x242   :  { %319 = vrot.lane.b32.xlu1 %v3783_v14, %s3672_s23 }
 0x246   :  { %372 = vrot.lane.b32.xlu1 %v3779_v10, %s3677_s12 }
 0x2b2   :  { %v248_v33 = vpop.xlane.xlu1 %247 }
 0x2b3   :  { %v252_v34 = vsub.f32 %v191_v23, %v248_v33 }
 0x2b5   :  { %v254_v35 = vmul.f32 1.442695, %v252_v34 }
 0x2b6   :  { %v251_v36 = vpop.xlane.xlu1 %250 }
 0x2b7   :  { %3514 = vpow2.f32 %v254_v35  ;;  %v253_v37 = vsub.f32 %v240_v27, %v251_v36 }
 0x2b9   :  { %v256_v38 = vmul.f32 1.442695, %v253_v37 }
 0x2ba   :  { %v271_v39 = vpop.permute.xlu1 %270 }
 0x2bb   :  { %3516 = vpow2.f32 %v256_v38  ;;  %v277_v40 = vsel %vm275_vm3, %v271_v39, 0 }
 0x2bc   :  { %3194 = vmatpush3.bf16.msra.mxu1 %v277_v40  ;;  %v71_v40 = vld [vmem:[%s4361_s2] sm:$0xff] }
 0x2bd   :  { %3205 = vmatprep.subr.bf16.mxu1 %v3674_v0 }
 0x2be   :  { %v320_v41 = vpop.permute.xlu1 %319 }
 0x2bf   :  { %v325_v42 = vsel %vm275_vm3, %v320_v41, 0 }
 0x2c0   :  { %3200 = vmatpush3.bf16.msra.mxu0 %v325_v42 }
 0x2c1   :  { %3211 = vmatprep.subr.bf16.mxu0 %v3674_v0 }
 0x2c2   :  { %v373_v47 = vpop.permute.xlu1 %372 }
 0x2c3   :  { %v378_v54 = vsel %vm150_vm2, %v373_v47, 0 }
 0x2c4   :  { %v3515_v43 = vpop.eup %3514 }
 0x2c5   :  { %v258_v44 = vsel %vm150_vm2, %v3515_v43, 0.0 }
 0x2c6   :  { %259 = vadd.xlane.f32.xlu0 %v258_v44 }
 0x2c8   :  { %v3517_v45 = vpop.eup %3516 }
 0x2c9   :  { %v261_v46 = vsel %vm150_vm2, %v3517_v45, 0.0 }
 0x2ca   :  { %262 = vadd.xlane.f32.xlu1 %v261_v46 }
 0x2db   :  { %423 = vrot.lane.b32.xlu1 %v3783_v14, %s3677_s12 }
 0x2dc   :  { %370 = vrot.lane.b32.xlu0 %v3790_v20, %s3678_s13 }
 0x2df   :  { %421 = vrot.lane.b32.xlu1 %v3797_v22, %s3678_s13 }
 0x34f   :  { %v260_v48 = vpop.xlane.xlu0 %259 }
 0x350   :  { %3518 = vrcp.f32 %v260_v48 }
 0x353   :  { %v263_v49 = vpop.xlane.xlu1 %262  ;;  %v371_v59 = vpop.permute.xlu0 %370 }
 0x354   :  { %3520 = vrcp.f32 %v263_v49 }
 0x357   :  { %v424_v56 = vpop.permute.xlu1 %423 }
 0x358   :  { %v429_v58 = vsel %vm150_vm2, %v424_v56, 0 }
 0x35b   :  { %v422_v60 = vpop.permute.xlu1 %421 }
 0x35d   :  { %v3519_v50 = vpop.eup %3518 }
 0x35e   :  { %v266_v51 = vmul.f32 %v3519_v50, %v3515_v43  ;;  %v367_v43 = vpack.c.bf16 %v71_v40, %v71_v40 }
 0x360   :  { %v268_v52 = vpack.c.bf16 %v266_v51, %v266_v51  ;;  %v644_v47 = vsel %vm275_vm3, %v367_v43, 0 }
 0x361   :  { %v3521_v53 = vpop.eup %3520 }
 0x362   :  { %3196 = vmatmul.mubr.msk.bf16.vlgmr.msra.gmra.mxu1 %vm150_vm2, %v268_v52  ;;  %v267_v55 = vmul.f32 %v3521_v53, %v3517_v45  ;;  %v72_v52 = vld [vmem:[%s4361_s2 + $0x8] sm:$0xff] }
 0x363   :  { %3206 = vmatpush3.bf16.xpose.msra.mxu1 %v378_v54  ;;  %3207 = vmatprep.mubr.msk.bf16.mxu1 %vm3675_vm0, %v3674_v0  ;;  %v591_v53 = vpack.c.bf16 %v72_v52, %v72_v52 }
 0x364   :  { %v269_v57 = vpack.c.bf16 %v267_v55, %v267_v55  ;;  %3217 = vmatprep.subr.bf16.mxu1 %v3674_v0 }
 0x365   :  { %v597_v54 = vsel %vm275_vm3, %v591_v53, 0 }
 0x366   :  { %3202 = vmatmul.mubr.msk.bf16.vlgmr.msra.gmra.mxu0 %vm150_vm2, %v269_v57 }
 0x367   :  { %3212 = vmatpush3.bf16.xpose.msra.mxu0 %v429_v58  ;;  %3213 = vmatprep.mubr.msk.bf16.mxu0 %vm3675_vm0, %v3674_v0 }
 0x368   :  { %3223 = vmatprep.subr.bf16.mxu0 %v3674_v0 }
 0x36a   :  { %3208 = vmatmul.mubr.msk.bf16.vlgmr.msra.gmra.mxu1 %vm150_vm2, %v371_v59 }
 0x36b   :  { %3219 = vmatprep.mubr.msk.bf16.mxu1 %vm3675_vm0, %v3674_v0 }
 0x36e   :  { %3214 = vmatmul.mubr.msk.bf16.vlgmr.msra.gmra.mxu0 %vm150_vm2, %v422_v60 }
 0x36f   :  { %3225 = vmatprep.mubr.msk.bf16.mxu0 %vm3675_vm0, %v3674_v0 }
 0x422   :  { %v3839_v61 = vpop.f32.mrf.mxu1 }
 0x424   :  { %v3197_v62 = vpop.f32.mrf.mxu1 }
 0x426   :  { %v316_v63 = vpop.f32.mrf.mxu1  ;;  %v3841_v1 = vpop.f32.mrf.mxu0 }
 0x427   :  { %v368_v2 = vpack.c.bf16 %v3841_v1, %v3839_v61 }
 0x428   :  { %v3198_v5 = vpop.f32.mrf.mxu1  ;;  %v3203_v6 = vpop.f32.mrf.mxu0 }
 0x42a   :  { %v364_v7 = vpop.f32.mrf.mxu0  ;;  %v414_v8 = vpop.f32.mrf.mxu1 }
 0x42b   :  { %v471_v9 = vsel %vm150_vm2, %v414_v8, -inf }
 0x42c   :  { %472 = vmax.xlane.f32.xlu1 %v471_v9  ;;  %v3204_v11 = vpop.f32.mrf.mxu0  ;;  %v3209_v12 = vpop.f32.mrf.mxu1 }
 0x42e   :  { %v417_v13 = vpop.f32.mrf.mxu1  ;;  %v465_v15 = vpop.f32.mrf.mxu0 }
 0x42f   :  { %v474_v16 = vsel %vm150_vm2, %v465_v15, -inf }
 0x430   :  { %v3210_v17 = vpop.f32.mrf.mxu1  ;;  %475 = vmax.xlane.f32.xlu0 %v474_v16  ;;  %v3215_v18 = vpop.f32.mrf.mxu0 }
 0x432   :  { %v468_v19 = vpop.f32.mrf.mxu0 }
 0x434   :  { %v3216_v21 = vpop.f32.mrf.mxu0 }
 0x446   :  { %543 = vrot.lane.b32.xlu0 %v3783_v14, %s3679_s14 }
 0x44a   :  { %687 = vrot.lane.b32.xlu0 %v3790_v20, %s3680_s15 }
 0x4b5   :  { %v473_v23 = vpop.xlane.xlu1 %472 }
 0x4b6   :  { %v477_v24 = vsub.f32 %v414_v8, %v473_v23 }
 0x4b8   :  { %v479_v25 = vmul.f32 1.442695, %v477_v24 }
 0x4b9   :  { %v476_v26 = vpop.xlane.xlu0 %475 }
 0x4ba   :  { %3522 = vpow2.f32 %v479_v25  ;;  %v478_v27 = vsub.f32 %v465_v15, %v476_v26 }
 0x4bc   :  { %v481_v28 = vmul.f32 1.442695, %v478_v27 }
 0x4bd   :  { %v544_v29 = vpop.permute.xlu0 %543 }
 0x4be   :  { %3524 = vpow2.f32 %v481_v28  ;;  %v549_v30 = vsel %vm275_vm3, %v544_v29, 0 }
 0x4bf   :  { %3224 = vmatpush3.bf16.msra.mxu0 %v549_v30 }
 0x4c0   :  { %3235 = vmatprep.subr.bf16.mxu0 %v3674_v0 }
 0x4c1   :  { %v688_v5 = vpop.permute.xlu0 %687 }
 0x4c7   :  { %v3523_v31 = vpop.eup %3522 }
 0x4c8   :  { %v483_v32 = vsel %vm150_vm2, %v3523_v31, 0.0 }
 0x4c9   :  { %484 = vadd.xlane.f32.xlu1 %v483_v32 }
 0x4cb   :  { %v3525_v33 = vpop.eup %3524 }
 0x4cc   :  { %v486_v34 = vsel %vm150_vm2, %v3525_v33, 0.0 }
 0x4cd   :  { %487 = vadd.xlane.f32.xlu1 %v486_v34 }
 0x4de   :  { %495 = vrot.lane.b32.xlu1 %v3779_v10, %s3679_s14 }
 0x4e2   :  { %689 = vrot.lane.b32.xlu1 %v3779_v10, %s3681_s18 }
 0x4e6   :  { %739 = vrot.lane.b32.xlu1 %v3783_v14, %s3681_s18 }
 0x4ea   :  { %737 = vrot.lane.b32.xlu1 %v3797_v22, %s3680_s15 }
 0x552   :  { %v485_v35 = vpop.xlane.xlu1 %484 }
 0x553   :  { %3526 = vrcp.f32 %v485_v35 }
 0x556   :  { %v488_v36 = vpop.xlane.xlu1 %487 }
 0x557   :  { %3528 = vrcp.f32 %v488_v36 }
 0x55a   :  { %v496_v37 = vpop.permute.xlu1 %495 }
 0x55b   :  { %v501_v38 = vsel %vm275_vm3, %v496_v37, 0 }
 0x55c   :  { %3218 = vmatpush3.bf16.msra.mxu1 %v501_v38 }
 0x55d   :  { %3229 = vmatprep.subr.bf16.mxu1 %v3674_v0 }
 0x55e   :  { %v690_v48 = vpop.permute.xlu1 %689 }
 0x55f   :  { %v695_v62 = vsel %vm150_vm2, %v690_v48, 0 }
 0x560   :  { %v3527_v39 = vpop.eup %3526 }
 0x561   :  { %v491_v41 = vmul.f32 %v3527_v39, %v3523_v31 }
 0x562   :  { %v740_v49 = vpop.permute.xlu1 %739 }
 0x563   :  { %v493_v42 = vpack.c.bf16 %v491_v41, %v491_v41  ;;  %v745_v50 = vsel %vm150_vm2, %v740_v49, 0 }
 0x564   :  { %v3529_v44 = vpop.eup %3528 }
 0x565   :  { %3220 = vmatmul.mubr.msk.bf16.vlgmr.msra.gmra.mxu1 %vm150_vm2, %v493_v42  ;;  %v492_v45 = vmul.f32 %v3529_v44, %v3525_v33 }
 0x566   :  { %3231 = vmatprep.mubr.msk.bf16.mxu1 %vm3675_vm0, %v3674_v0  ;;  %v738_v51 = vpop.permute.xlu1 %737  ;;  %3230 = vmatpush3.bf16.msra.mxu1 %v597_v54 }
 0x567   :  { %v494_v46 = vpack.c.bf16 %v492_v45, %v492_v45  ;;  %3241 = vmatprep.subr.bf16.mxu1 %v3674_v0 }
 0x569   :  { %3226 = vmatmul.mubr.msk.bf16.vlgmr.msra.gmra.mxu0 %vm150_vm2, %v494_v46 }
 0x56a   :  { %3236 = vmatpush3.bf16.msra.mxu0 %v644_v47  ;;  %3237 = vmatprep.mubr.msk.bf16.mxu0 %vm3675_vm0, %v3674_v0 }
 0x56b   :  { %3247 = vmatprep.subr.bf16.mxu0 %v3674_v0 }
 0x571   :  { %3238 = vmatmul.mubr.msk.bf16.vlgmr.msra.gmra.mxu0 %vm150_vm2, %v368_v2 }
 0x572   :  { %3248 = vmatpush3.bf16.xpose.msra.mxu0 %v745_v50  ;;  %3249 = vmatprep.mubr.msk.bf16.mxu0 %vm3675_vm0, %v3674_v0  ;;  %v73_v50 = vld [vmem:[%s4361_s2 + $0x10] sm:$0xff] }
 0x573   :  { %3259 = vmatprep.subr.bf16.mxu0 %v3674_v0 }
 0x579   :  { %3250 = vmatmul.mubr.msk.bf16.vlgmr.msra.gmra.mxu0 %vm150_vm2, %v738_v51  ;;  %v907_v51 = vpack.c.bf16 %v73_v50, %v73_v50 }
 0x57a   :  { %3261 = vmatprep.mubr.msk.bf16.mxu0 %vm3675_vm0, %v3674_v0 }
 0x57b   :  { %v913_v52 = vsel %vm275_vm3, %v907_v51, 0 }
 0x625   :  { %v537_v55 = vpop.f32.mrf.mxu1 }
 0x627   :  { %v3221_v56 = vpop.f32.mrf.mxu1 }
 0x629   :  { %v540_v57 = vpop.f32.mrf.mxu1  ;;  %v585_v58 = vpop.f32.mrf.mxu0 }
 0x62a   :  { %v592_v59 = vpack.c.bf16 %v585_v58, %v537_v55 }
 0x62b   :  { %v3222_v60 = vpop.f32.mrf.mxu1  ;;  %v3227_v61 = vpop.f32.mrf.mxu0 }
 0x62c   :  { %3232 = vmatmul.mubr.msk.bf16.vlgmr.msra.gmra.mxu1 %vm150_vm2, %v592_v59 }
 0x62d   :  { %3242 = vmatpush3.bf16.xpose.msra.mxu1 %v695_v62  ;;  %v588_v63 = vpop.f32.mrf.mxu0  ;;  %3243 = vmatprep.mubr.msk.bf16.mxu1 %vm3675_vm0, %v3674_v0 }
 0x62e   :  { %3253 = vmatprep.subr.bf16.mxu1 %v3674_v0 }
 0x62f   :  { %v3228_v1 = vpop.f32.mrf.mxu0 }
 0x631   :  { %v3897_v2 = vpop.f32.mrf.mxu0 }
 0x633   :  { %v3239_v6 = vpop.f32.mrf.mxu0 }
 0x634   :  { %3244 = vmatmul.mubr.msk.bf16.vlgmr.msra.gmra.mxu1 %vm150_vm2, %v688_v5 }
 0x635   :  { %v3900_v7 = vpop.f32.mrf.mxu0  ;;  %3255 = vmatprep.mubr.msk.bf16.mxu1 %vm3675_vm0, %v3674_v0 }
 0x637   :  { %v3240_v8 = vpop.f32.mrf.mxu0 }
 0x639   :  { %v781_v9 = vpop.f32.mrf.mxu0 }
 0x63a   :  { %v790_v11 = vsel %vm150_vm2, %v781_v9, -inf }
 0x63b   :  { %791 = vmax.xlane.f32.xlu1 %v790_v11  ;;  %v3251_v12 = vpop.f32.mrf.mxu0 }
 0x63d   :  { %v784_v13 = vpop.f32.mrf.mxu0 }
 0x63f   :  { %v3252_v15 = vpop.f32.mrf.mxu0 }
 0x64c   :  { %811 = vrot.lane.b32.xlu1 %v3779_v10, %s3682_s24 }
 0x650   :  { %960 = vrot.lane.b32.xlu1 %v3779_v10, %s3683_s25 }
 0x654   :  { %1010 = vrot.lane.b32.xlu1 %v3783_v14, %s3683_s25 }
 0x658   :  { %1008 = vrot.lane.b32.xlu1 %v3797_v22, %s3684_s26 }
 0x6c4   :  { %v792_v16 = vpop.xlane.xlu1 %791 }
 0x6c5   :  { %v794_v19 = vsub.f32 %v781_v9, %v792_v16 }
 0x6c7   :  { %v797_v21 = vmul.f32 1.442695, %v794_v19 }
 0x6c8   :  { %v812_v17 = vpop.permute.xlu1 %811 }
 0x6c9   :  { %v817_v18 = vsel %vm275_vm3, %v812_v17, 0  ;;  %3530 = vpow2.f32 %v797_v21 }
 0x6ca   :  { %3254 = vmatpush3.bf16.msra.mxu1 %v817_v18 }
 0x6cb   :  { %3265 = vmatprep.subr.bf16.mxu1 %v3674_v0 }
 0x6cc   :  { %v961_v44 = vpop.permute.xlu1 %960 }
 0x6cd   :  { %v966_v46 = vsel %vm150_vm2, %v961_v44, 0 }
 0x6d0   :  { %v1011_v58 = vpop.permute.xlu1 %1010 }
 0x6d1   :  { %v1016_v5 = vsel %vm150_vm2, %v1011_v58, 0 }
 0x6d4   :  { %v1009_v11 = vpop.permute.xlu1 %1008 }
 0x6d6   :  { %v3531_v22 = vpop.eup %3530 }
 0x6d7   :  { %v802_v31 = vsel %vm150_vm2, %v3531_v22, 0.0 }
 0x6ec   :  { %v3915_v23 = vpop.f32.mrf.mxu1 }
 0x6ed   :  { %v681_v18 = vadd.f32 %v3897_v2, %v3915_v23 }
 0x6ee   :  { %v3233_v24 = vpop.f32.mrf.mxu1 }
 0x6f0   :  { %v3917_v25 = vpop.f32.mrf.mxu1 }
 0x6f2   :  { %v3234_v26 = vpop.f32.mrf.mxu1 }
 0x6f3   :  { %v684_v26 = vadd.f32 %v3900_v7, %v3917_v25 }
 0x6f4   :  { %v731_v27 = vpop.f32.mrf.mxu1 }
 0x6f5   :  { %v787_v28 = vsel %vm150_vm2, %v731_v27, -inf }
 0x6f6   :  { %788 = vmax.xlane.f32.xlu0 %v787_v28  ;;  %v3245_v29 = vpop.f32.mrf.mxu1 }
 0x6f8   :  { %v734_v30 = vpop.f32.mrf.mxu1 }
 0x6fa   :  { %v3246_v32 = vpop.f32.mrf.mxu1  ;;  %803 = vadd.xlane.f32.xlu0 %v802_v31 }
 0x77f   :  { %v789_v33 = vpop.xlane.xlu0 %788 }
 0x780   :  { %v793_v34 = vsub.f32 %v731_v27, %v789_v33 }
 0x782   :  { %v795_v35 = vmul.f32 1.442695, %v793_v34 }
 0x783   :  { %v804_v38 = vpop.xlane.xlu0 %803 }
 0x784   :  { %3532 = vpow2.f32 %v795_v35 }
 0x785   :  { %3534 = vrcp.f32 %v804_v38 }
 0x791   :  { %v3533_v36 = vpop.eup %3532 }
 0x792   :  { %v799_v37 = vsel %vm150_vm2, %v3533_v36, 0.0  ;;  %v3535_v39 = vpop.eup %3534 }
 0x793   :  { %800 = vadd.xlane.f32.xlu0 %v799_v37  ;;  %v808_v41 = vmul.f32 %v3535_v39, %v3531_v22 }
 0x795   :  { %v810_v45 = vpack.c.bf16 %v808_v41, %v808_v41 }
 0x7a9   :  { %859 = vrot.lane.b32.xlu0 %v3783_v14, %s3682_s24 }
 0x7ad   :  { %958 = vrot.lane.b32.xlu0 %v3790_v20, %s3684_s26 }
 0x81c   :  { %v801_v40 = vpop.xlane.xlu0 %800 }
 0x81d   :  { %3536 = vrcp.f32 %v801_v40  ;;  %v74_v40 = vld [vmem:[%s4361_s2 + $0x18] sm:$0xff] }
 0x81e   :  { %v1178_v41 = vpack.c.bf16 %v74_v40, %v74_v40 }
 0x820   :  { %v860_v42 = vpop.permute.xlu0 %859 }
 0x821   :  { %v865_v43 = vsel %vm275_vm3, %v860_v42, 0  ;;  %v1184_v42 = vsel %vm275_vm3, %v1178_v41, 0 }
 0x822   :  { %3260 = vmatpush3.bf16.msra.mxu0 %v865_v43 }
 0x823   :  { %3271 = vmatprep.subr.bf16.mxu0 %v3674_v0 }
 0x824   :  { %v959_v48 = vpop.permute.xlu0 %958 }
 0x825   :  { %3262 = vmatmul.mubr.msk.bf16.vlgmr.msra.gmra.mxu0 %vm150_vm2, %v810_v45 }
 0x826   :  { %3272 = vmatpush3.bf16.xpose.msra.mxu0 %v966_v46  ;;  %3273 = vmatprep.mubr.msk.bf16.mxu0 %vm3675_vm0, %v3674_v0 }
 0x827   :  { %3283 = vmatprep.subr.bf16.mxu0 %v3674_v0 }
 0x82a   :  { %v3537_v20 = vpop.eup %3536 }
 0x82b   :  { %v807_v47 = vmul.f32 %v3537_v20, %v3533_v36 }
 0x82d   :  { %3274 = vmatmul.mubr.msk.bf16.vlgmr.msra.gmra.mxu0 %vm150_vm2, %v959_v48  ;;  %v809_v49 = vpack.c.bf16 %v807_v47, %v807_v47 }
 0x82e   :  { %3285 = vmatprep.mubr.msk.bf16.mxu0 %vm3675_vm0, %v3674_v0 }
 0x82f   :  { %3256 = vmatmul.mubr.msk.bf16.vlgmr.msra.gmra.mxu1 %vm150_vm2, %v809_v49 }
 0x830   :  { %3267 = vmatprep.mubr.msk.bf16.mxu1 %vm3675_vm0, %v3674_v0  ;;  %3266 = vmatpush3.bf16.msra.mxu1 %v913_v52 }
 0x831   :  { %3277 = vmatprep.subr.bf16.mxu1 %v3674_v0 }
 0x8e5   :  { %v901_v53 = vpop.f32.mrf.mxu0 }
 0x8e7   :  { %v3263_v54 = vpop.f32.mrf.mxu0 }
 0x8e9   :  { %v904_v55 = vpop.f32.mrf.mxu0 }
 0x8eb   :  { %v3264_v56 = vpop.f32.mrf.mxu0 }
 0x8ec   :  { %v1229_v56 = vlaneseq }
 0x8ed   :  { %v1002_v57 = vpop.f32.mrf.mxu0 }
 0x8ee   :  { %v1058_v59 = vsel %vm150_vm2, %v1002_v57, -inf }
 0x8ef   :  { %v853_v60 = vpop.f32.mrf.mxu1  ;;  %1059 = vmax.xlane.f32.xlu0 %v1058_v59  ;;  %v3275_v61 = vpop.f32.mrf.mxu0  ;;  %v3992_v59 = vld [vmem:[%s4366_s7] sm:$0x3f] }
 0x8f0   :  { %v908_v62 = vpack.c.bf16 %v901_v53, %v853_v60 }
 0x8f1   :  { %v3257_v63 = vpop.f32.mrf.mxu1  ;;  %v1005_v1 = vpop.f32.mrf.mxu0 }
 0x8f2   :  { %3268 = vmatmul.mubr.msk.bf16.vlgmr.msra.gmra.mxu1 %vm150_vm2, %v908_v62 }
 0x8f3   :  { %3278 = vmatpush3.bf16.xpose.msra.mxu1 %v1016_v5  ;;  %v856_v6 = vpop.f32.mrf.mxu1  ;;  %v3276_v8 = vpop.f32.mrf.mxu0  ;;  %3279 = vmatprep.mubr.msk.bf16.mxu1 %vm3675_vm0, %v3674_v0 }
 0x8f4   :  { %3289 = vmatprep.subr.bf16.mxu1 %v3674_v0 }
 0x8f5   :  { %v3258_v9 = vpop.f32.mrf.mxu1 }
 0x8fa   :  { %3280 = vmatmul.mubr.msk.bf16.vlgmr.msra.gmra.mxu1 %vm150_vm2, %v1009_v11 }
 0x8fb   :  { %3291 = vmatprep.mubr.msk.bf16.mxu1 %vm3675_vm0, %v3674_v0 }
 0x978   :  { %v1060_v12 = vpop.xlane.xlu0 %1059 }
 0x979   :  { %v1064_v13 = vsub.f32 %v1002_v57, %v1060_v12  ;;  %v3986_v57 = vshrl.u32 %v1229_v56, 7 }
 0x97b   :  { %v1066_v15 = vmul.f32 1.442695, %v1064_v13  ;;  %v1231_v58 = vsub.s32 0, %v3986_v57 }
 0x97d   :  { %3538 = vpow2.f32 %v1066_v15  ;;  %v1232_v60 = vrot.slane %v3992_v59, %v1231_v58 }
 0x98a   :  { %v3539_v16 = vpop.eup %3538 }
 0x98b   :  { %v1070_v17 = vsel %vm150_vm2, %v3539_v16, 0.0 }
 0x98c   :  { %1071 = vadd.xlane.f32.xlu0 %v1070_v17 }
 0x9b2   :  { %v949_v19 = vpop.f32.mrf.mxu1 }
 0x9b3   :  { %v3956_v21 = vadd.f32 %v949_v19, %v681_v18 }
 0x9b4   :  { %v3269_v24 = vpop.f32.mrf.mxu1 }
 0x9b6   :  { %v952_v27 = vpop.f32.mrf.mxu1 }
 0x9b7   :  { %v3960_v28 = vadd.f32 %v952_v27, %v684_v26 }
 0x9b8   :  { %v3270_v22 = vpop.f32.mrf.mxu1 }
 0x9b9   :  { %v3499_v22 = vld [vmem:[%s4362_s3] sm:$0xff]  }
 0x9ba   :  { %v1052_v29 = vpop.f32.mrf.mxu1 }
 0x9bb   :  { %v1061_v30 = vsel %vm150_vm2, %v1052_v29, -inf }
 0x9bc   :  { %1062 = vmax.xlane.f32.xlu1 %v1061_v30  ;;  %v3281_v31 = vpop.f32.mrf.mxu1 }
 0x9be   :  { %v1055_v32 = vpop.f32.mrf.mxu1 }
 0x9c0   :  { %v3282_v33 = vpop.f32.mrf.mxu1 }
 0x9cd   :  { %1082 = vrot.lane.b32.xlu1 %v3779_v10, %s3685_s8 }
 0xa15   :  { %v1072_v2 = vpop.xlane.xlu0 %1071 }
 0xa16   :  { %3540 = vrcp.f32 %v1072_v2 }
 0xa23   :  { %v3541_v23 = vpop.eup %3540 }
 0xa24   :  { %v1078_v35 = vmul.f32 %v3541_v23, %v3539_v16  ;;  %v1266_v23 = vsub.s32 1, %v3986_v57 }
 0xa26   :  { %v1080_v38 = vpack.c.bf16 %v1078_v35, %v1078_v35  ;;  %v1272_v35 = vsub.s32 2, %v3986_v57 }
 0xa45   :  { %v1063_v34 = vpop.xlane.xlu1 %1062 }
 0xa46   :  { %v1065_v7 = vsub.f32 %v1052_v29, %v1063_v34 }
 0xa48   :  { %v1068_v25 = vmul.f32 1.442695, %v1065_v7 }
 0xa49   :  { %v1083_v36 = vpop.permute.xlu1 %1082 }
 0xa4a   :  { %3542 = vpow2.f32 %v1068_v25  ;;  %v1088_v37 = vsel %vm275_vm3, %v1083_v36, 0  ;;  %v1267_v25 = vrot.slane %v3992_v59, %v1266_v23 }
 0xa4b   :  { %3284 = vmatpush3.bf16.msra.mxu0 %v1088_v37 }
 0xa4c   :  { %3295 = vmatprep.subr.bf16.mxu0 %v3674_v0 }
 0xa4e   :  { %3286 = vmatmul.mubr.msk.bf16.vlgmr.msra.gmra.mxu0 %vm150_vm2, %v1080_v38 }
 0xa4f   :  { %3297 = vmatprep.mubr.msk.bf16.mxu0 %vm3675_vm0, %v3674_v0  ;;  %3296 = vmatpush3.bf16.msra.mxu0 %v1184_v42 }
 0xa50   :  { %3309 = vmatprep.subr.bf16.mxu0 %v3674_v0 }
 0xa57   :  { %v3543_v10 = vpop.eup %3542 }
 0xa58   :  { %v1073_v39 = vsel %vm150_vm2, %v3543_v10, 0.0 }
 0xa59   :  { %1074 = vadd.xlane.f32.xlu0 %v1073_v39 }
 0xa6f   :  { %1130 = vrot.lane.b32.xlu0 %v3783_v14, %s3685_s8 }
 0xae2   :  { %v1075_v43 = vpop.xlane.xlu0 %1074 }
 0xae3   :  { %3544 = vrcp.f32 %v1075_v43  ;;  %v3500_v43 = vld [vmem:[%s4363_s4 + $0x18] sm:$0xff]  }
 0xae6   :  { %v1131_v44 = vpop.permute.xlu0 %1130 }
 0xae7   :  { %v1136_v45 = vsel %vm275_vm3, %v1131_v44, 0  ;;  %v3501_v44 = vld [vmem:[%s4363_s4 + $0x10] sm:$0xff]  }
 0xae8   :  { %3290 = vmatpush3.bf16.msra.mxu1 %v1136_v45  ;;  %v3502_v45 = vld [vmem:[%s4363_s4 + $0x8] sm:$0xff]  }
 0xae9   :  { %3301 = vmatprep.subr.bf16.mxu1 %v3674_v0 }
 0xaf0   :  { %v3545_v46 = vpop.eup %3544 }
 0xaf1   :  { %v1079_v14 = vmul.f32 %v3545_v46, %v3543_v10  ;;  %v1273_v10 = vrot.slane %v3992_v59, %v1272_v35  ;;  %v3503_v46 = vld [vmem:[%s4363_s4] sm:$0xff]  }
 0xaf3   :  { %v1081_v20 = vpack.c.bf16 %v1079_v14, %v1079_v14  ;;  %v2999_v14 = vld [vmem:[%s4365_s6] ss:$0 sm:$0xff] }
 0xaf5   :  { %3292 = vmatmul.mubr.msk.bf16.vlgmr.msra.gmra.mxu1 %vm150_vm2, %v1081_v20 }
 0xaf6   :  { %3305 = vmatprep.mubr.msk.bf16.mxu1 %vm3675_vm0, %v3674_v0 }
 0xb0e   :  { %v1124_v47 = vpop.f32.mrf.mxu0 }
 0xb10   :  { %v3287_v48 = vpop.f32.mrf.mxu0 }
 0xb12   :  { %v1127_v49 = vpop.f32.mrf.mxu0 }
 0xb14   :  { %v3288_v50 = vpop.f32.mrf.mxu0 }
 0xbb5   :  { %v1172_v51 = vpop.f32.mrf.mxu1 }
 0xbb6   :  { %v1179_v52 = vpack.c.bf16 %v1172_v51, %v1124_v47 }
 0xbb7   :  { %v3293_v53 = vpop.f32.mrf.mxu1 }
 0xbb8   :  { %3298 = vmatmul.mubr.msk.bf16.vlgmr.msra.gmra.mxu0 %vm150_vm2, %v1179_v52 }
 0xbb9   :  { %v1175_v54 = vpop.f32.mrf.mxu1  ;;  %3317 = vmatprep.mubr.msk.bf16.mxu0 %vm3675_vm0, %v3674_v0  ;;  %3310 = vmatpush3.bf16.msra.mxu0 %v3500_v43 }
 0xbba   :  { %3311 = vmatprep.subr.bf16.mxu0 %v3674_v0 }
 0xbbb   :  { %v3294_v55 = vpop.f32.mrf.mxu1 }
 0xbbd   :  { %3312 = vmatpush3.bf16.msra.mxu0 %v3501_v44 }
 0xbbe   :  { %3313 = vmatprep.subr.bf16.mxu0 %v3674_v0 }
 0xbc1   :  { %3314 = vmatpush3.bf16.msra.mxu0 %v3502_v45 }
 0xbc2   :  { %3315 = vmatprep.subr.bf16.mxu0 %v3674_v0 }
 0xbc5   :  { %3316 = vmatpush3.bf16.msra.mxu0 %v3503_v46 }
 0xbc6   :  { %3335 = vmatprep.subr.bf16.mxu0 %v3674_v0 }
 0xc78   :  { %v1220_v61 = vpop.f32.mrf.mxu0 }
 0xc79   :  { %v1227_v62 = vadd.f32 %v1220_v61, %v3956_v21 }
 0xc7a   :  { %v3299_v63 = vpop.f32.mrf.mxu0 }
 0xc7b   :  { %v1233_v1 = vadd.f32 %v1232_v60, %v1227_v62 }
 0xc7c   :  { %v1223_v5 = vpop.f32.mrf.mxu0 }
 0xc7d   :  { %v1228_v6 = vadd.f32 %v1223_v5, %v3960_v28  ;;  %v1235_v8 = vadd.f32 %v1233_v1, %v3765_v3 }
 0xc7e   :  { %v3300_v9 = vpop.f32.mrf.mxu0 }
 0xc7f   :  { %v1234_v11 = vadd.f32 %v1232_v60, %v1228_v6  ;;  %v1237_v12 = vsel %vm96_vm1, %v1235_v8, 0.0  ;;  %v1365_v6 = vsub.s32 3, %v3986_v57 }
 0xc80   :  { %1238 = vadd.xlane.f32.xlu1 %v1237_v12 }
 0xc81   :  { %v1236_v13 = vadd.f32 %v1234_v11, %v3767_v4  ;;  %v3498_v4 = vld [vmem:[%s4362_s3 + $0x8] sm:$0xff]  }
 0xc82   :  { %3302 = vmatpush3.bf16.msra.mxu1 %v3498_v4 }
 0xc83   :  { %v1240_v15 = vsel %vm96_vm1, %v1236_v13, 0.0  ;;  %3303 = vmatprep.subr.bf16.mxu1 %v3674_v0 }
 0xc84   :  { %1241 = vadd.xlane.f32.xlu0 %v1240_v15 }
 0xc86   :  { %3304 = vmatpush3.bf16.msra.mxu1 %v3499_v22 }
 0xc87   :  { %3321 = vmatprep.subr.bf16.mxu1 %v3674_v0 }
 0xd09   :  { %v1239_v16 = vpop.xlane.xlu1 %1238 }
 0xd0a   :  { %v1244_v17 = vmul.f32 0.03125, %v1239_v16 }
 0xd0c   :  { %v1246_v18 = vsub.f32 %v1235_v8, %v1244_v17  ;;  %v1366_v8 = vrot.slane %v3992_v59, %v1365_v6 }
 0xd0d   :  { %v1242_v19 = vpop.xlane.xlu0 %1241 }
 0xd0e   :  { %v1245_v21 = vmul.f32 0.03125, %v1242_v19  ;;  %v1248_v24 = vmul.f32 %v1246_v18, %v1246_v18 }
 0xd10   :  { %v1247_v26 = vsub.f32 %v1236_v13, %v1245_v21  ;;  %v1250_v27 = vsel %vm96_vm1, %v1248_v24, 0.0 }
 0xd11   :  { %1251 = vadd.xlane.f32.xlu1 %v1250_v27 }
 0xd12   :  { %v1249_v3 = vmul.f32 %v1247_v26, %v1247_v26 }
 0xd14   :  { %v1253_v28 = vsel %vm96_vm1, %v1249_v3, 0.0 }
 0xd15   :  { %1254 = vadd.xlane.f32.xlu0 %v1253_v28 }
 0xd9a   :  { %v1252_v29 = vpop.xlane.xlu1 %1251 }
 0xd9b   :  { %v1256_v30 = vmul.f32 0.03125, %v1252_v29 }
 0xd9d   :  { %v1258_v31 = vadd.f32 1e-12, %v1256_v30 }
 0xd9e   :  { %v1255_v32 = vpop.xlane.xlu0 %1254 }
 0xd9f   :  { %3546 = vrsqrt.f32 %v1258_v31  ;;  %v1257_v33 = vmul.f32 0.03125, %v1255_v32  ;;  %v3504_v32 = vld [vmem:[%s4360_s1 + $0x18] sm:$0xff]  }
 0xda1   :  { %v1259_v2 = vadd.f32 1e-12, %v1257_v33  ;;  %v3505_v33 = vld [vmem:[%s4360_s1 + $0x10] sm:$0xff]  }
 0xda3   :  { %3548 = vrsqrt.f32 %v1259_v2 }
 0xdac   :  { %v3547_v34 = vpop.eup %3546 }
 0xdad   :  { %v1262_v7 = vmul.f32 %v3547_v34, %v1246_v18 }
 0xdaf   :  { %v1268_v38 = vmul.f32 %v1267_v25, %v1262_v7 }
 0xdb0   :  { %v3549_v36 = vpop.eup %3548 }
 0xdb1   :  { %v1263_v37 = vmul.f32 %v3549_v36, %v1247_v26  ;;  %v1274_v40 = vadd.f32 %v1273_v10, %v1268_v38  ;;  %v1466_v38 = vsub.s32 4, %v3986_v57 }
 0xdb3   :  { %v1269_v39 = vmul.f32 %v1267_v25, %v1263_v37 }
 0xdb5   :  { %v1275_v41 = vadd.f32 %v1273_v10, %v1269_v39 }
 0xdb7   :  { %v1276_v42 = vpack.c.bf16 %v1275_v41, %v1274_v40 }
 0xdb9   :  { %3306 = vmatmul.mubr.msk.bf16.vlgmr.msra.gmra.mxu1 %vm96_vm1, %v1276_v42 }
 0xdba   :  { %3325 = vmatprep.mubr.msk.bf16.mxu1 %vm3675_vm0, %v3674_v0  ;;  %3322 = vmatpush3.bf16.msra.mxu1 %v3504_v32 }
 0xdbb   :  { %3323 = vmatprep.subr.bf16.mxu1 %v3674_v0 }
 0xdbe   :  { %3324 = vmatpush3.bf16.msra.mxu1 %v3505_v33 }
 0xdbf   :  { %3329 = vmatprep.subr.bf16.mxu1 %v3674_v0 }
 0xe79   :  { %v1337_v20 = vpop.f32.mrf.mxu1 }
 0xe7a   :  { %v1338_v47 = vadd.f32 %v2999_v14, %v1337_v20 }
 0xe7b   :  { %v3307_v48 = vpop.f32.mrf.mxu1 }
 0xe7c   :  { %v1346_v49 = vmul.f32 0.70710677, %v1338_v47  ;;  %v1344_v60 = vmul.f32 0.5, %v1338_v47  ;;  %v3018_v48 = vld [vmem:[%s4364_s5 + $0x1] ss:$0 sm:$0xff]  ;;  %s2962_s5 = sshll.u32 %s3686_s20, 4  ;;  %s2963_s5 = int_to_ptr.vmem [resolvable:$true] %s2962_s5 }
 0xe7d   :  { %v1340_v50 = vpop.f32.mrf.mxu1  ;;  %p3647_p11 = scmp.lt.s32.totalorder %s2963_s5, %s2963_s5 }
 0xe7e   :  { %3550 = verf.f32 %v1346_v49  ;;  %v1341_v51 = vadd.f32 %v2999_v14, %v1340_v50 }
 0xe7f   :  { %v3308_v52 = vpop.f32.mrf.mxu1 }
 0xe80   :  { %v1347_v53 = vmul.f32 0.70710677, %v1341_v51  ;;  %v1345_v61 = vmul.f32 0.5, %v1341_v51 }
 0xe82   :  { %3552 = verf.f32 %v1347_v53 }
 0xe8b   :  { %v3551_v54 = vpop.eup %3550 }
 0xe8c   :  { %v1350_v55 = vadd.f32 1.0, %v3551_v54 }
 0xe8e   :  { %v1352_v63 = vmul.f32 %v1350_v55, %v1344_v60 }
 0xe8f   :  { %v3553_v56 = vpop.eup %3552 }
 0xe90   :  { %v1351_v62 = vadd.f32 1.0, %v3553_v56 }
 0xe92   :  { %v1353_v1 = vmul.f32 %v1351_v62, %v1345_v61 }
 0xe94   :  { %v1354_v5 = vpack.c.bf16 %v1353_v1, %v1352_v63 }
 0xe96   :  { %3318 = vmatmul.mubr.msk.bf16.vlgmr.msra.gmra.mxu0 %vm1391_vm4, %v1354_v5 }
 0xe97   :  { %3337 = vmatprep.mubr.msk.bf16.mxu0 %vm3675_vm0, %v3674_v0 }
 0xf56   :  { %v1429_v9 = vpop.f32.mrf.mxu0 }
 0xf57   :  { %v1430_v11 = vadd.f32 %v1429_v9, %v1366_v8 }
 0xf58   :  { %v3319_v12 = vpop.f32.mrf.mxu0 }
 0xf59   :  { %v1436_v13 = vadd.f32 %v1430_v11, %v1274_v40  ;;  %v1467_v40 = vrot.slane %v3992_v59, %v1466_v38 }
 0xf5a   :  { %v1432_v15 = vpop.f32.mrf.mxu0 }
 0xf5b   :  { %v1433_v16 = vadd.f32 %v1432_v15, %v1366_v8  ;;  %v1438_v17 = vsel %vm96_vm1, %v1436_v13, 0.0 }
 0xf5c   :  { %1439 = vadd.xlane.f32.xlu1 %v1438_v17  ;;  %v3320_v18 = vpop.f32.mrf.mxu0 }
 0xf5d   :  { %v1437_v19 = vadd.f32 %v1433_v16, %v1275_v41  ;;  %v1472_v41 = vsub.s32 5, %v3986_v57 }
 0xf5f   :  { %v1441_v21 = vsel %vm96_vm1, %v1437_v19, 0.0  ;;  %v1473_v45 = vrot.slane %v3992_v59, %v1472_v41 }
 0xf60   :  { %1442 = vadd.xlane.f32.xlu0 %v1441_v21 }
 0xfe5   :  { %v1440_v24 = vpop.xlane.xlu1 %1439 }
 0xfe6   :  { %v1444_v26 = vmul.f32 0.03125, %v1440_v24 }
 0xfe8   :  { %v1446_v27 = vsub.f32 %v1436_v13, %v1444_v26 }
 0xfe9   :  { %v1443_v3 = vpop.xlane.xlu0 %1442 }
 0xfea   :  { %v1445_v28 = vmul.f32 0.03125, %v1443_v3  ;;  %v1448_v4 = vmul.f32 %v1446_v27, %v1446_v27 }
 0xfec   :  { %v1447_v22 = vsub.f32 %v1437_v19, %v1445_v28  ;;  %v1450_v29 = vsel %vm96_vm1, %v1448_v4, 0.0 }
 0xfed   :  { %1451 = vadd.xlane.f32.xlu1 %v1450_v29 }
 0xfee   :  { %v1449_v30 = vmul.f32 %v1447_v22, %v1447_v22 }
 0xff0   :  { %v1453_v31 = vsel %vm96_vm1, %v1449_v30, 0.0 }
 0xff1   :  { %1454 = vadd.xlane.f32.xlu0 %v1453_v31 }
0x1076   :  { %v1452_v2 = vpop.xlane.xlu1 %1451 }
0x1077   :  { %v1456_v34 = vmul.f32 0.03125, %v1452_v2 }
0x1079   :  { %v1458_v7 = vadd.f32 1e-12, %v1456_v34 }
0x107a   :  { %v1455_v25 = vpop.xlane.xlu0 %1454 }
0x107b   :  { %3554 = vrsqrt.f32 %v1458_v7  ;;  %v1457_v36 = vmul.f32 0.03125, %v1455_v25 }
0x107d   :  { %v1459_v37 = vadd.f32 1e-12, %v1457_v36 }
0x107f   :  { %3556 = vrsqrt.f32 %v1459_v37 }
0x1088   :  { %v3555_v10 = vpop.eup %3554 }
0x1089   :  { %v1462_v39 = vmul.f32 %v3555_v10, %v1446_v27 }
0x108b   :  { %v1468_v44 = vmul.f32 %v1467_v40, %v1462_v39 }
0x108c   :  { %v3557_v42 = vpop.eup %3556 }
0x108d   :  { %v1463_v43 = vmul.f32 %v3557_v42, %v1447_v22  ;;  %v4070_v14 = vadd.f32 %v1473_v45, %v1468_v44 }
0x108f   :  { %v1469_v46 = vmul.f32 %v1467_v40, %v1463_v43 }
0x1091   :  { %v4072_v20 = vadd.f32 %v1473_v45, %v1469_v46 }
0x1093   :  { %v1488_v47 = vpack.c.bf16 %v4072_v20, %v4070_v14 }
0x1095   :  { %3326 = vmatmul.mubr.msk.bf16.vlgmr.msra.gmra.mxu1 %vm96_vm1, %v1488_v47 }
0x1096   :  { %3331 = vmatprep.mubr.msk.bf16.mxu1 %vm3675_vm0, %v3674_v0 }
0x1155   :  { %v1546_v49 = vpop.f32.mrf.mxu1 }
0x1156   :  { %v1547_v50 = vadd.f32 %v3018_v48, %v1546_v49 }
0x1157   :  { %v3327_v59 = vpop.f32.mrf.mxu1 }
0x1158   :  { %v4082_v51 = vpack.c.bf16 %v1547_v50, %v1547_v50  ;;  %v1553_v61 = vmul.f32 0.35355338, %v1547_v50 }
0x1159   :  { %v1549_v52 = vpop.f32.mrf.mxu1 }
0x115a   :  { %v1550_v53 = vadd.f32 %v3018_v48, %v1549_v52  ;;  %1560 = vrot.lane.b32.xlu1 %v4082_v51, %s3676_s11  ;;  %v4093_v1 = vpack.c.bf16 %v1553_v61, %v1553_v61 }
0x115b   :  { %v3328_v54 = vpop.f32.mrf.mxu1 }
0x115c   :  { %v4086_v55 = vpack.c.bf16 %v1550_v53, %v1550_v53  ;;  %v1554_v5 = vmul.f32 0.35355338, %v1550_v53 }
0x115e   :  { %1609 = vrot.lane.b32.xlu0 %v4086_v55, %s3676_s11  ;;  %v4100_v8 = vpack.c.bf16 %v1554_v5, %v1554_v5 }
0x11cc   :  { %v1561_v56 = vpop.permute.xlu1 %1560 }
0x11cd   :  { %v1566_v60 = vsel %vm150_vm2, %v1561_v56, 0 }
0x11ce   :  { %3330 = vmatpush3.bf16.xpose.msra.mxu1 %v1566_v60 }
0x11cf   :  { %3341 = vmatprep.subr.bf16.mxu1 %v3674_v0 }
0x11d0   :  { %v1610_v62 = vpop.permute.xlu0 %1609 }
0x11d1   :  { %v1615_v63 = vsel %vm150_vm2, %v1610_v62, 0 }
0x11d2   :  { %3336 = vmatpush3.bf16.xpose.msra.mxu0 %v1615_v63 }
0x11d3   :  { %3347 = vmatprep.subr.bf16.mxu0 %v3674_v0 }
0x11d5   :  { %3332 = vmatmul.mubr.msk.bf16.vlgmr.msra.gmra.mxu1 %vm150_vm2, %v4093_v1 }
0x11d6   :  { %3343 = vmatprep.mubr.msk.bf16.mxu1 %vm3675_vm0, %v3674_v0 }
0x11d9   :  { %3338 = vmatmul.mubr.msk.bf16.vlgmr.msra.gmra.mxu0 %vm150_vm2, %v4100_v8 }
0x11da   :  { %3349 = vmatprep.mubr.msk.bf16.mxu0 %vm3675_vm0, %v3674_v0 }
0x1295   :  { %v1602_v9 = vpop.f32.mrf.mxu1 }
0x1296   :  { %v1657_v11 = vsel %vm150_vm2, %v1602_v9, -inf }
0x1297   :  { %1658 = vmax.xlane.f32.xlu1 %v1657_v11  ;;  %v3333_v12 = vpop.f32.mrf.mxu1 }
0x1299   :  { %v1605_v13 = vpop.f32.mrf.mxu1  ;;  %v1651_v15 = vpop.f32.mrf.mxu0 }
0x129a   :  { %v1660_v16 = vsel %vm150_vm2, %v1651_v15, -inf }
0x129b   :  { %v3334_v17 = vpop.f32.mrf.mxu1  ;;  %1661 = vmax.xlane.f32.xlu0 %v1660_v16  ;;  %v3339_v18 = vpop.f32.mrf.mxu0 }
0x129d   :  { %v1654_v19 = vpop.f32.mrf.mxu0 }
0x129f   :  { %v3340_v21 = vpop.f32.mrf.mxu0 }
0x12a8   :  { %1681 = vrot.lane.b32.xlu1 %v4082_v51, %s3672_s23 }
0x1320   :  { %v1659_v24 = vpop.xlane.xlu1 %1658 }
0x1321   :  { %v1663_v26 = vsub.f32 %v1602_v9, %v1659_v24 }
0x1323   :  { %v1665_v27 = vmul.f32 1.442695, %v1663_v26 }
0x1324   :  { %v1682_v3 = vpop.permute.xlu1 %1681  ;;  %v1662_v28 = vpop.xlane.xlu0 %1661 }
0x1325   :  { %3558 = vpow2.f32 %v1665_v27  ;;  %v1687_v4 = vsel %vm275_vm3, %v1682_v3, 0  ;;  %v1664_v22 = vsub.f32 %v1651_v15, %v1662_v28 }
0x1326   :  { %3342 = vmatpush3.bf16.msra.mxu1 %v1687_v4 }
0x1327   :  { %v1667_v29 = vmul.f32 1.442695, %v1664_v22  ;;  %3353 = vmatprep.subr.bf16.mxu1 %v3674_v0 }
0x1329   :  { %3560 = vpow2.f32 %v1667_v29 }
0x1332   :  { %v3559_v30 = vpop.eup %3558 }
0x1333   :  { %v1669_v31 = vsel %vm150_vm2, %v3559_v30, 0.0 }
0x1334   :  { %1670 = vadd.xlane.f32.xlu1 %v1669_v31 }
0x1336   :  { %v3561_v32 = vpop.eup %3560 }
0x1337   :  { %v1672_v33 = vsel %vm150_vm2, %v3561_v32, 0.0 }
0x1338   :  { %1673 = vadd.xlane.f32.xlu0 %v1672_v33 }
0x1345   :  { %1782 = vrot.lane.b32.xlu1 %v4082_v51, %s3677_s12 }
0x1349   :  { %1833 = vrot.lane.b32.xlu1 %v4086_v55, %s3677_s12 }
0x134d   :  { %1831 = vrot.lane.b32.xlu1 %v4100_v8, %s3678_s13 }
0x134e   :  { %1729 = vrot.lane.b32.xlu0 %v4086_v55, %s3672_s23  ;;  %s3642_s23 = scalar_lea.vmem %s2963_s5, 256 }
0x134f   :  { %p3643_p10 = scmp.ne.s32.totalorder %s2963_s5, %s3642_s23  ;;  %p3648_p12 = scmp.lt.s32.totalorder %s3642_s23, %s3642_s23 }
0x1351   :  { %p3649_p13 = por %p3648_p12, %p3647_p11 }
0x1352   :  { %1780 = vrot.lane.b32.xlu0 %v4093_v1, %s3678_s13 }
0x1353   :  { %p3650_p0 = pnand %p3649_p13, %p3643_p10 }
0x13bd   :  { %v1671_v2 = vpop.xlane.xlu1 %1670 }
0x13be   :  { %3562 = vrcp.f32 %v1671_v2 }
0x13c1   :  { %v1674_v34 = vpop.xlane.xlu0 %1673  ;;  %v1783_v37 = vpop.permute.xlu1 %1782 }
0x13c2   :  { %3564 = vrcp.f32 %v1674_v34  ;;  %v1788_v42 = vsel %vm150_vm2, %v1783_v37, 0 }
0x13c5   :  { %v1730_v7 = vpop.permute.xlu0 %1729  ;;  %v1834_v44 = vpop.permute.xlu1 %1833 }
0x13c6   :  { %v1735_v25 = vsel %vm275_vm3, %v1730_v7, 0  ;;  %v1839_v46 = vsel %vm150_vm2, %v1834_v44, 0  ;;  %v3012_v7 = vld [vmem:[%s4361_s2 + $0x20] sm:$0xff] }
0x13c7   :  { %3348 = vmatpush3.bf16.msra.mxu0 %v1735_v25  ;;  %v1777_v37 = vpack.c.bf16 %v3012_v7, %v3012_v7 }
0x13c8   :  { %3359 = vmatprep.subr.bf16.mxu0 %v3674_v0 }
0x13c9   :  { %v1781_v47 = vpop.permute.xlu0 %1780  ;;  %v1832_v48 = vpop.permute.xlu1 %1831 }
0x13cb   :  { %v3563_v36 = vpop.eup %3562 }
0x13cc   :  { %v1677_v10 = vmul.f32 %v3563_v36, %v3559_v30 }
0x13ce   :  { %v1679_v39 = vpack.c.bf16 %v1677_v10, %v1677_v10 }
0x13cf   :  { %v3565_v40 = vpop.eup %3564 }
0x13d0   :  { %3344 = vmatmul.mubr.msk.bf16.vlgmr.msra.gmra.mxu1 %vm150_vm2, %v1679_v39  ;;  %v1678_v43 = vmul.f32 %v3565_v40, %v3561_v32 }
0x13d1   :  { %3354 = vmatpush3.bf16.xpose.msra.mxu1 %v1788_v42  ;;  %3355 = vmatprep.mubr.msk.bf16.mxu1 %vm3675_vm0, %v3674_v0  ;;  %v2054_v42 = vsel %vm275_vm3, %v1777_v37, 0 }
0x13d2   :  { %v1680_v45 = vpack.c.bf16 %v1678_v43, %v1678_v43  ;;  %3365 = vmatprep.subr.bf16.mxu1 %v3674_v0 }
0x13d4   :  { %3350 = vmatmul.mubr.msk.bf16.vlgmr.msra.gmra.mxu0 %vm150_vm2, %v1680_v45 }
0x13d5   :  { %3360 = vmatpush3.bf16.xpose.msra.mxu0 %v1839_v46  ;;  %3361 = vmatprep.mubr.msk.bf16.mxu0 %vm3675_vm0, %v3674_v0 }
0x13d6   :  { %3371 = vmatprep.subr.bf16.mxu0 %v3674_v0 }
0x13d8   :  { %3356 = vmatmul.mubr.msk.bf16.vlgmr.msra.gmra.mxu1 %vm150_vm2, %v1781_v47  ;;  %v3013_v47 = vld [vmem:[%s4361_s2 + $0x28] sm:$0xff] }
0x13d9   :  { %3367 = vmatprep.mubr.msk.bf16.mxu1 %vm3675_vm0, %v3674_v0 }
0x13dc   :  { %3362 = vmatmul.mubr.msk.bf16.vlgmr.msra.gmra.mxu0 %vm150_vm2, %v1832_v48  ;;  %v2001_v48 = vpack.c.bf16 %v3013_v47, %v3013_v47 }
0x13dd   :  { %3373 = vmatprep.mubr.msk.bf16.mxu0 %vm3675_vm0, %v3674_v0 }
0x1490   :  { %v4142_v49 = vpop.f32.mrf.mxu1 }
0x1492   :  { %v3345_v50 = vpop.f32.mrf.mxu1 }
0x1494   :  { %v1726_v59 = vpop.f32.mrf.mxu1  ;;  %v4144_v52 = vpop.f32.mrf.mxu0 }
0x1495   :  { %v1778_v53 = vpack.c.bf16 %v4144_v52, %v4142_v49  ;;  %v2007_v49 = vsel %vm275_vm3, %v2001_v48, 0 }
0x1496   :  { %v3346_v54 = vpop.f32.mrf.mxu1  ;;  %v3351_v56 = vpop.f32.mrf.mxu0 }
0x1498   :  { %v1774_v60 = vpop.f32.mrf.mxu0  ;;  %v1824_v61 = vpop.f32.mrf.mxu1 }
0x1499   :  { %v1881_v62 = vsel %vm150_vm2, %v1824_v61, -inf }
0x149a   :  { %1882 = vmax.xlane.f32.xlu0 %v1881_v62  ;;  %v3352_v63 = vpop.f32.mrf.mxu0  ;;  %v3357_v5 = vpop.f32.mrf.mxu1 }
0x149c   :  { %v1827_v9 = vpop.f32.mrf.mxu1  ;;  %v1875_v11 = vpop.f32.mrf.mxu0 }
0x149d   :  { %v1884_v12 = vsel %vm150_vm2, %v1875_v11, -inf }
0x149e   :  { %v3358_v13 = vpop.f32.mrf.mxu1  ;;  %1885 = vmax.xlane.f32.xlu1 %v1884_v12  ;;  %v3363_v15 = vpop.f32.mrf.mxu0 }
0x14a0   :  { %v1878_v16 = vpop.f32.mrf.mxu0 }
0x14a2   :  { %v3364_v17 = vpop.f32.mrf.mxu0 }
0x14af   :  { %1905 = vrot.lane.b32.xlu1 %v4082_v51, %s3679_s14 }
0x14b3   :  { %2099 = vrot.lane.b32.xlu1 %v4082_v51, %s3681_s18 }
0x14b7   :  { %2149 = vrot.lane.b32.xlu1 %v4086_v55, %s3681_s18 }
0x14bb   :  { %2147 = vrot.lane.b32.xlu1 %v4100_v8, %s3680_s15 }
0x1523   :  { %v1883_v18 = vpop.xlane.xlu0 %1882 }
0x1524   :  { %v1887_v19 = vsub.f32 %v1824_v61, %v1883_v18 }
0x1526   :  { %v1889_v21 = vmul.f32 1.442695, %v1887_v19 }
0x1527   :  { %v1886_v24 = vpop.xlane.xlu1 %1885 }
0x1528   :  { %3566 = vpow2.f32 %v1889_v21  ;;  %v1888_v26 = vsub.f32 %v1875_v11, %v1886_v24 }
0x152a   :  { %v1891_v27 = vmul.f32 1.442695, %v1888_v26 }
0x152b   :  { %v1906_v3 = vpop.permute.xlu1 %1905 }
0x152c   :  { %3568 = vpow2.f32 %v1891_v27  ;;  %v1911_v28 = vsel %vm275_vm3, %v1906_v3, 0 }
0x152d   :  { %3366 = vmatpush3.bf16.msra.mxu1 %v1911_v28 }
0x152e   :  { %3377 = vmatprep.subr.bf16.mxu1 %v3674_v0 }
0x152f   :  { %v2100_v43 = vpop.permute.xlu1 %2099 }
0x1530   :  { %v2105_v61 = vsel %vm150_vm2, %v2100_v43, 0 }
0x1533   :  { %v2150_v44 = vpop.permute.xlu1 %2149 }
0x1534   :  { %v2155_v45 = vsel %vm150_vm2, %v2150_v44, 0 }
0x1535   :  { %v3567_v4 = vpop.eup %3566 }
0x1536   :  { %v1893_v22 = vsel %vm150_vm2, %v3567_v4, 0.0 }
0x1537   :  { %1894 = vadd.xlane.f32.xlu0 %v1893_v22  ;;  %v2148_v46 = vpop.permute.xlu1 %2147 }
0x1539   :  { %v3569_v29 = vpop.eup %3568 }
0x153a   :  { %v1896_v30 = vsel %vm150_vm2, %v3569_v29, 0.0 }
0x153b   :  { %1897 = vadd.xlane.f32.xlu0 %v1896_v30 }
0x1551   :  { %1953 = vrot.lane.b32.xlu0 %v4086_v55, %s3679_s14 }
0x1555   :  { %2097 = vrot.lane.b32.xlu0 %v4093_v1, %s3680_s15 }
0x15c0   :  { %v1895_v31 = vpop.xlane.xlu0 %1894 }
0x15c1   :  { %3570 = vrcp.f32 %v1895_v31 }
0x15c4   :  { %v1898_v32 = vpop.xlane.xlu0 %1897 }
0x15c5   :  { %3572 = vrcp.f32 %v1898_v32 }
0x15c8   :  { %v1954_v33 = vpop.permute.xlu0 %1953 }
0x15c9   :  { %v1959_v2 = vsel %vm275_vm3, %v1954_v33, 0 }
0x15ca   :  { %3372 = vmatpush3.bf16.msra.mxu0 %v1959_v2 }
0x15cb   :  { %3383 = vmatprep.subr.bf16.mxu0 %v3674_v0 }
0x15cc   :  { %v2098_v9 = vpop.permute.xlu0 %2097 }
0x15ce   :  { %v3571_v34 = vpop.eup %3570 }
0x15cf   :  { %v1901_v25 = vmul.f32 %v3571_v34, %v3567_v4 }
0x15d1   :  { %v1903_v36 = vpack.c.bf16 %v1901_v25, %v1901_v25 }
0x15d2   :  { %v3573_v10 = vpop.eup %3572 }
0x15d3   :  { %3368 = vmatmul.mubr.msk.bf16.vlgmr.msra.gmra.mxu1 %vm150_vm2, %v1903_v36  ;;  %v1902_v39 = vmul.f32 %v3573_v10, %v3569_v29 }
0x15d4   :  { %3379 = vmatprep.mubr.msk.bf16.mxu1 %vm3675_vm0, %v3674_v0  ;;  %3378 = vmatpush3.bf16.msra.mxu1 %v2007_v49 }
0x15d5   :  { %v1904_v40 = vpack.c.bf16 %v1902_v39, %v1902_v39  ;;  %3389 = vmatprep.subr.bf16.mxu1 %v3674_v0 }
0x15d7   :  { %3374 = vmatmul.mubr.msk.bf16.vlgmr.msra.gmra.mxu0 %vm150_vm2, %v1904_v40 }
0x15d8   :  { %3384 = vmatpush3.bf16.msra.mxu0 %v2054_v42  ;;  %3385 = vmatprep.mubr.msk.bf16.mxu0 %vm3675_vm0, %v3674_v0 }
0x15d9   :  { %3395 = vmatprep.subr.bf16.mxu0 %v3674_v0 }
0x15df   :  { %3386 = vmatmul.mubr.msk.bf16.vlgmr.msra.gmra.mxu0 %vm150_vm2, %v1778_v53 }
0x15e0   :  { %3396 = vmatpush3.bf16.xpose.msra.mxu0 %v2155_v45  ;;  %3397 = vmatprep.mubr.msk.bf16.mxu0 %vm3675_vm0, %v3674_v0 }
0x15e1   :  { %3407 = vmatprep.subr.bf16.mxu0 %v3674_v0 }
0x15e7   :  { %3398 = vmatmul.mubr.msk.bf16.vlgmr.msra.gmra.mxu0 %vm150_vm2, %v2148_v46 }
0x15e8   :  { %3409 = vmatprep.mubr.msk.bf16.mxu0 %vm3675_vm0, %v3674_v0 }
0x1693   :  { %v1947_v50 = vpop.f32.mrf.mxu1 }
0x1695   :  { %v3369_v59 = vpop.f32.mrf.mxu1 }
0x1697   :  { %v1950_v52 = vpop.f32.mrf.mxu1  ;;  %v1995_v53 = vpop.f32.mrf.mxu0 }
0x1698   :  { %v2002_v54 = vpack.c.bf16 %v1995_v53, %v1947_v50  ;;  %v3014_v52 = vld [vmem:[%s4361_s2 + $0x30] sm:$0xff] }
0x1699   :  { %v3370_v56 = vpop.f32.mrf.mxu1  ;;  %v3375_v60 = vpop.f32.mrf.mxu0  ;;  %v2317_v53 = vpack.c.bf16 %v3014_v52, %v3014_v52 }
0x169a   :  { %3380 = vmatmul.mubr.msk.bf16.vlgmr.msra.gmra.mxu1 %vm150_vm2, %v2002_v54 }
0x169b   :  { %3390 = vmatpush3.bf16.xpose.msra.mxu1 %v2105_v61  ;;  %v1998_v62 = vpop.f32.mrf.mxu0  ;;  %3391 = vmatprep.mubr.msk.bf16.mxu1 %vm3675_vm0, %v3674_v0  ;;  %v2323_v54 = vsel %vm275_vm3, %v2317_v53, 0 }
0x169c   :  { %3401 = vmatprep.subr.bf16.mxu1 %v3674_v0 }
0x169d   :  { %v3376_v63 = vpop.f32.mrf.mxu0 }
0x169f   :  { %v4200_v5 = vpop.f32.mrf.mxu0 }
0x16a1   :  { %v3387_v11 = vpop.f32.mrf.mxu0 }
0x16a2   :  { %3392 = vmatmul.mubr.msk.bf16.vlgmr.msra.gmra.mxu1 %vm150_vm2, %v2098_v9 }
0x16a3   :  { %v4203_v12 = vpop.f32.mrf.mxu0  ;;  %3403 = vmatprep.mubr.msk.bf16.mxu1 %vm3675_vm0, %v3674_v0 }
0x16a5   :  { %v3388_v13 = vpop.f32.mrf.mxu0 }
0x16a7   :  { %v2191_v15 = vpop.f32.mrf.mxu0 }
0x16a8   :  { %v2200_v16 = vsel %vm150_vm2, %v2191_v15, -inf }
0x16a9   :  { %2201 = vmax.xlane.f32.xlu1 %v2200_v16  ;;  %v3399_v17 = vpop.f32.mrf.mxu0 }
0x16ab   :  { %v2194_v18 = vpop.f32.mrf.mxu0 }
0x16ad   :  { %v3400_v19 = vpop.f32.mrf.mxu0 }
0x16ba   :  { %2221 = vrot.lane.b32.xlu1 %v4082_v51, %s3682_s24 }
0x16be   :  { %2370 = vrot.lane.b32.xlu1 %v4082_v51, %s3683_s25 }
0x16c2   :  { %2420 = vrot.lane.b32.xlu1 %v4086_v55, %s3683_s25 }
0x16c6   :  { %2418 = vrot.lane.b32.xlu1 %v4100_v8, %s3684_s26 }
0x1732   :  { %v2202_v21 = vpop.xlane.xlu1 %2201 }
0x1733   :  { %v2204_v27 = vsub.f32 %v2191_v15, %v2202_v21 }
0x1735   :  { %v2207_v3 = vmul.f32 1.442695, %v2204_v27 }
0x1736   :  { %v2222_v24 = vpop.permute.xlu1 %2221 }
0x1737   :  { %v2227_v26 = vsel %vm275_vm3, %v2222_v24, 0  ;;  %3574 = vpow2.f32 %v2207_v3 }
0x1738   :  { %3402 = vmatpush3.bf16.msra.mxu1 %v2227_v26 }
0x1739   :  { %3413 = vmatprep.subr.bf16.mxu1 %v3674_v0 }
0x173a   :  { %v2371_v46 = vpop.permute.xlu1 %2370 }
0x173b   :  { %v2376_v48 = vsel %vm150_vm2, %v2371_v46, 0 }
0x173e   :  { %v2421_v9 = vpop.permute.xlu1 %2420 }
0x173f   :  { %v2426_v19 = vsel %vm150_vm2, %v2421_v9, 0 }
0x1742   :  { %v2419_v27 = vpop.permute.xlu1 %2418 }
0x1744   :  { %v3575_v8 = vpop.eup %3574 }
0x1745   :  { %v2212_v2 = vsel %vm150_vm2, %v3575_v8, 0.0 }
0x175a   :  { %v4218_v28 = vpop.f32.mrf.mxu1 }
0x175c   :  { %v3381_v4 = vpop.f32.mrf.mxu1 }
0x175e   :  { %v4220_v22 = vpop.f32.mrf.mxu1 }
0x1760   :  { %v3382_v29 = vpop.f32.mrf.mxu1 }
0x1762   :  { %v2141_v30 = vpop.f32.mrf.mxu1 }
0x1763   :  { %v2197_v31 = vsel %vm150_vm2, %v2141_v30, -inf }
0x1764   :  { %2198 = vmax.xlane.f32.xlu0 %v2197_v31  ;;  %v3393_v32 = vpop.f32.mrf.mxu1 }
0x1766   :  { %v2144_v33 = vpop.f32.mrf.mxu1 }
0x1768   :  { %v3394_v34 = vpop.f32.mrf.mxu1  ;;  %2213 = vadd.xlane.f32.xlu0 %v2212_v2 }
0x1769   :  { %v2094_v34 = vadd.f32 %v4203_v12, %v4220_v22 }
0x17ed   :  { %v2199_v7 = vpop.xlane.xlu0 %2198 }
0x17ee   :  { %v2203_v25 = vsub.f32 %v2141_v30, %v2199_v7 }
0x17f0   :  { %v2205_v36 = vmul.f32 1.442695, %v2203_v25 }
0x17f1   :  { %v2214_v39 = vpop.xlane.xlu0 %2213 }
0x17f2   :  { %3576 = vpow2.f32 %v2205_v36 }
0x17f3   :  { %3578 = vrcp.f32 %v2214_v39 }
0x17ff   :  { %v3577_v37 = vpop.eup %3576 }
0x1800   :  { %v2209_v10 = vsel %vm150_vm2, %v3577_v37, 0.0  ;;  %v3579_v40 = vpop.eup %3578 }
0x1801   :  { %2210 = vadd.xlane.f32.xlu0 %v2209_v10  ;;  %v2218_v43 = vmul.f32 %v3579_v40, %v3575_v8  ;;  %v2091_v8 = vadd.f32 %v4200_v5, %v4218_v28 }
0x1803   :  { %v2220_v47 = vpack.c.bf16 %v2218_v43, %v2218_v43 }
0x1817   :  { %2269 = vrot.lane.b32.xlu0 %v4086_v55, %s3682_s24 }
0x181b   :  { %2368 = vrot.lane.b32.xlu0 %v4093_v1, %s3684_s26 }
0x188a   :  { %v2211_v42 = vpop.xlane.xlu0 %2210 }
0x188b   :  { %3580 = vrcp.f32 %v2211_v42 }
0x188e   :  { %v2270_v44 = vpop.permute.xlu0 %2269 }
0x188f   :  { %v2275_v45 = vsel %vm275_vm3, %v2270_v44, 0 }
0x1890   :  { %3408 = vmatpush3.bf16.msra.mxu0 %v2275_v45 }
0x1891   :  { %3419 = vmatprep.subr.bf16.mxu0 %v3674_v0 }
0x1892   :  { %v2369_v50 = vpop.permute.xlu0 %2368 }
0x1893   :  { %3410 = vmatmul.mubr.msk.bf16.vlgmr.msra.gmra.mxu0 %vm150_vm2, %v2220_v47 }
0x1894   :  { %3420 = vmatpush3.bf16.xpose.msra.mxu0 %v2376_v48  ;;  %3421 = vmatprep.mubr.msk.bf16.mxu0 %vm3675_vm0, %v3674_v0 }
0x1895   :  { %3431 = vmatprep.subr.bf16.mxu0 %v3674_v0 }
0x1898   :  { %v3581_v1 = vpop.eup %3580 }
0x1899   :  { %v2217_v49 = vmul.f32 %v3581_v1, %v3577_v37  ;;  %v3015_v1 = vld [vmem:[%s4361_s2 + $0x38] sm:$0xff] }
0x189b   :  { %3422 = vmatmul.mubr.msk.bf16.vlgmr.msra.gmra.mxu0 %vm150_vm2, %v2369_v50  ;;  %v2219_v59 = vpack.c.bf16 %v2217_v49, %v2217_v49  ;;  %v2588_v49 = vpack.c.bf16 %v3015_v1, %v3015_v1 }
0x189c   :  { %3433 = vmatprep.mubr.msk.bf16.mxu0 %vm3675_vm0, %v3674_v0 }
0x189d   :  { %3404 = vmatmul.mubr.msk.bf16.vlgmr.msra.gmra.mxu1 %vm150_vm2, %v2219_v59  ;;  %v2594_v50 = vsel %vm275_vm3, %v2588_v49, 0 }
0x189e   :  { %3415 = vmatprep.mubr.msk.bf16.mxu1 %vm3675_vm0, %v3674_v0  ;;  %3414 = vmatpush3.bf16.msra.mxu1 %v2323_v54 }
0x189f   :  { %3425 = vmatprep.subr.bf16.mxu1 %v3674_v0 }
0x1953   :  { %v2311_v56 = vpop.f32.mrf.mxu0 }
0x1955   :  { %v3411_v60 = vpop.f32.mrf.mxu0 }
0x1957   :  { %v2314_v61 = vpop.f32.mrf.mxu0 }
0x1959   :  { %v3412_v62 = vpop.f32.mrf.mxu0 }
0x195b   :  { %v2412_v63 = vpop.f32.mrf.mxu0 }
0x195c   :  { %v2468_v11 = vsel %vm150_vm2, %v2412_v63, -inf }
0x195d   :  { %v2263_v13 = vpop.f32.mrf.mxu1  ;;  %2469 = vmax.xlane.f32.xlu0 %v2468_v11  ;;  %v3423_v15 = vpop.f32.mrf.mxu0 }
0x195e   :  { %v2318_v16 = vpack.c.bf16 %v2311_v56, %v2263_v13 }
0x195f   :  { %v3405_v17 = vpop.f32.mrf.mxu1  ;;  %v2415_v18 = vpop.f32.mrf.mxu0 }
0x1960   :  { %3416 = vmatmul.mubr.msk.bf16.vlgmr.msra.gmra.mxu1 %vm150_vm2, %v2318_v16  ;;  %v4288_v17 = vld [vmem:[%s4366_s7 + $0x8] sm:$0x3f] }
0x1961   :  { %3426 = vmatpush3.bf16.xpose.msra.mxu1 %v2426_v19  ;;  %v2266_v21 = vpop.f32.mrf.mxu1  ;;  %v3424_v24 = vpop.f32.mrf.mxu0  ;;  %3427 = vmatprep.mubr.msk.bf16.mxu1 %vm3675_vm0, %v3674_v0  ;;  %v2642_v18 = vrot.slane %v4288_v17, %v1231_v58 }
0x1962   :  { %3437 = vmatprep.subr.bf16.mxu1 %v3674_v0 }
0x1963   :  { %v3406_v26 = vpop.f32.mrf.mxu1 }
0x1968   :  { %3428 = vmatmul.mubr.msk.bf16.vlgmr.msra.gmra.mxu1 %vm150_vm2, %v2419_v27 }
0x1969   :  { %3439 = vmatprep.mubr.msk.bf16.mxu1 %vm3675_vm0, %v3674_v0 }
0x19e6   :  { %v2470_v3 = vpop.xlane.xlu0 %2469 }
0x19e7   :  { %v2474_v4 = vsub.f32 %v2412_v63, %v2470_v3 }
0x19e9   :  { %v2476_v29 = vmul.f32 1.442695, %v2474_v4 }
0x19eb   :  { %3582 = vpow2.f32 %v2476_v29 }
0x19f8   :  { %v3583_v30 = vpop.eup %3582 }
0x19f9   :  { %v2480_v31 = vsel %vm150_vm2, %v3583_v30, 0.0 }
0x19fa   :  { %2481 = vadd.xlane.f32.xlu0 %v2480_v31 }
0x1a20   :  { %v2359_v32 = vpop.f32.mrf.mxu1 }
0x1a21   :  { %v2366_v33 = vadd.f32 %v2359_v32, %v2091_v8 }
0x1a22   :  { %v3417_v2 = vpop.f32.mrf.mxu1 }
0x1a24   :  { %v2362_v7 = vpop.f32.mrf.mxu1 }
0x1a25   :  { %v2367_v25 = vadd.f32 %v2362_v7, %v2094_v34 }
0x1a26   :  { %v3418_v36 = vpop.f32.mrf.mxu1 }
0x1a28   :  { %v2462_v37 = vpop.f32.mrf.mxu1 }
0x1a29   :  { %v2471_v10 = vsel %vm150_vm2, %v2462_v37, -inf }
0x1a2a   :  { %2472 = vmax.xlane.f32.xlu1 %v2471_v10  ;;  %v3429_v39 = vpop.f32.mrf.mxu1 }
0x1a2b   :  { %v3507_v39 = vld [vmem:[%s4362_s3 + $0x10] sm:$0xff]  }
0x1a2c   :  { %v2465_v40 = vpop.f32.mrf.mxu1 }
0x1a2e   :  { %v3430_v42 = vpop.f32.mrf.mxu1 }
0x1a3b   :  { %2492 = vrot.lane.b32.xlu1 %v4082_v51, %s3685_s8 }
0x1a83   :  { %v2482_v5 = vpop.xlane.xlu0 %2481 }
0x1a84   :  { %3584 = vrcp.f32 %v2482_v5 }
0x1a91   :  { %v3585_v28 = vpop.eup %3584 }
0x1a92   :  { %v2488_v12 = vmul.f32 %v3585_v28, %v3583_v30 }
0x1a94   :  { %v2490_v47 = vpack.c.bf16 %v2488_v12, %v2488_v12 }
0x1ab3   :  { %v2473_v43 = vpop.xlane.xlu1 %2472 }
0x1ab4   :  { %v2475_v44 = vsub.f32 %v2462_v37, %v2473_v43 }
0x1ab6   :  { %v2478_v45 = vmul.f32 1.442695, %v2475_v44 }
0x1ab7   :  { %v2493_v22 = vpop.permute.xlu1 %2492 }
0x1ab8   :  { %3586 = vpow2.f32 %v2478_v45  ;;  %v2498_v46 = vsel %vm275_vm3, %v2493_v22, 0  ;;  %v2676_v22 = vrot.slane %v4288_v17, %v1266_v23  ;;  %v3508_v23 = vld [vmem:[%s4363_s4 + $0x38] sm:$0xff]  }
0x1ab9   :  { %3432 = vmatpush3.bf16.msra.mxu0 %v2498_v46 }
0x1aba   :  { %3443 = vmatprep.subr.bf16.mxu0 %v3674_v0 }
0x1abc   :  { %3434 = vmatmul.mubr.msk.bf16.vlgmr.msra.gmra.mxu0 %vm150_vm2, %v2490_v47 }
0x1abd   :  { %3445 = vmatprep.mubr.msk.bf16.mxu0 %vm3675_vm0, %v3674_v0  ;;  %3444 = vmatpush3.bf16.msra.mxu0 %v2594_v50 }
0x1abe   :  { %3457 = vmatprep.subr.bf16.mxu0 %v3674_v0 }
0x1ac5   :  { %v3587_v51 = vpop.eup %3586 }
0x1ac6   :  { %v2483_v48 = vsel %vm150_vm2, %v3587_v51, 0.0 }
0x1ac7   :  { %2484 = vadd.xlane.f32.xlu0 %v2483_v48  ;;  %v2682_v48 = vrot.slane %v4288_v17, %v1272_v35  ;;  %v3509_v35 = vld [vmem:[%s4363_s4 + $0x30] sm:$0xff]  }
0x1add   :  { %2540 = vrot.lane.b32.xlu0 %v4086_v55, %s3685_s8 }
0x1b50   :  { %v2485_v59 = vpop.xlane.xlu0 %2484 }
0x1b51   :  { %3588 = vrcp.f32 %v2485_v59 }
0x1b54   :  { %v2541_v52 = vpop.permute.xlu0 %2540 }
0x1b55   :  { %v2546_v53 = vsel %vm275_vm3, %v2541_v52, 0  ;;  %v3510_v52 = vld [vmem:[%s4363_s4 + $0x28] sm:$0xff]  }
0x1b56   :  { %3438 = vmatpush3.bf16.msra.mxu1 %v2546_v53  ;;  %v3511_v53 = vld [vmem:[%s4363_s4 + $0x20] sm:$0xff]  }
0x1b57   :  { %3449 = vmatprep.subr.bf16.mxu1 %v3674_v0 }
0x1b5e   :  { %v3589_v54 = vpop.eup %3588 }
0x1b5f   :  { %v2489_v55 = vmul.f32 %v3589_v54, %v3587_v51  ;;  %v3047_v54 = vld [vmem:[%s4365_s6 + $0x1] ss:$0 sm:$0xff] }
0x1b61   :  { %v2491_v56 = vpack.c.bf16 %v2489_v55, %v2489_v55 }
0x1b63   :  { %3440 = vmatmul.mubr.msk.bf16.vlgmr.msra.gmra.mxu1 %vm150_vm2, %v2491_v56 }
0x1b64   :  { %3453 = vmatprep.mubr.msk.bf16.mxu1 %vm3675_vm0, %v3674_v0 }
0x1b7c   :  { %v2534_v60 = vpop.f32.mrf.mxu0 }
0x1b7e   :  { %v3435_v61 = vpop.f32.mrf.mxu0 }
0x1b80   :  { %v2537_v62 = vpop.f32.mrf.mxu0 }
0x1b82   :  { %v3436_v63 = vpop.f32.mrf.mxu0 }
0x1c23   :  { %v2582_v9 = vpop.f32.mrf.mxu1 }
0x1c24   :  { %v2589_v11 = vpack.c.bf16 %v2582_v9, %v2534_v60 }
0x1c25   :  { %v3441_v13 = vpop.f32.mrf.mxu1 }
0x1c26   :  { %3446 = vmatmul.mubr.msk.bf16.vlgmr.msra.gmra.mxu0 %vm150_vm2, %v2589_v11 }
0x1c27   :  { %v2585_v15 = vpop.f32.mrf.mxu1  ;;  %3465 = vmatprep.mubr.msk.bf16.mxu0 %vm3675_vm0, %v3674_v0  ;;  %3458 = vmatpush3.bf16.msra.mxu0 %v3508_v23 }
0x1c28   :  { %3459 = vmatprep.subr.bf16.mxu0 %v3674_v0 }
0x1c29   :  { %v3442_v16 = vpop.f32.mrf.mxu1 }
0x1c2b   :  { %3460 = vmatpush3.bf16.msra.mxu0 %v3509_v35 }
0x1c2c   :  { %3461 = vmatprep.subr.bf16.mxu0 %v3674_v0 }
0x1c2f   :  { %3462 = vmatpush3.bf16.msra.mxu0 %v3510_v52  ;;  %v3064_v52 = vld [vmem:[%s4368_s9] ss:$0 sm:$0xff] }
0x1c30   :  { %3463 = vmatprep.subr.bf16.mxu0 %v3674_v0 }
0x1c33   :  { %3464 = vmatpush3.bf16.msra.mxu0 %v3511_v53 }
0x1ce6   :  { %v2630_v19 = vpop.f32.mrf.mxu0 }
0x1ce7   :  { %v2637_v21 = vadd.f32 %v2630_v19, %v2366_v33 }
0x1ce8   :  { %v3447_v24 = vpop.f32.mrf.mxu0 }
0x1ce9   :  { %v2643_v26 = vadd.f32 %v2642_v18, %v2637_v21 }
0x1cea   :  { %v2633_v27 = vpop.f32.mrf.mxu0 }
0x1ceb   :  { %v2638_v3 = vadd.f32 %v2633_v27, %v2367_v25  ;;  %v2645_v4 = vadd.f32 %v2643_v26, %v4070_v14 }
0x1cec   :  { %v3448_v29 = vpop.f32.mrf.mxu0 }
0x1ced   :  { %v2644_v30 = vadd.f32 %v2642_v18, %v2638_v3  ;;  %v2647_v31 = vsel %vm96_vm1, %v2645_v4, 0.0  ;;  %v2778_v3 = vrot.slane %v4288_v17, %v1365_v6 }
0x1cee   :  { %2648 = vadd.xlane.f32.xlu1 %v2647_v31 }
0x1cef   :  { %v2646_v8 = vadd.f32 %v2644_v30, %v4072_v20  ;;  %v3506_v20 = vld [vmem:[%s4362_s3 + $0x18] sm:$0xff]  }
0x1cf0   :  { %3450 = vmatpush3.bf16.msra.mxu1 %v3506_v20 }
0x1cf1   :  { %v2650_v32 = vsel %vm96_vm1, %v2646_v8, 0.0  ;;  %3451 = vmatprep.subr.bf16.mxu1 %v3674_v0 }
0x1cf2   :  { %2651 = vadd.xlane.f32.xlu0 %v2650_v32 }
0x1cf4   :  { %3452 = vmatpush3.bf16.msra.mxu1 %v3507_v39 }
0x1cf5   :  { %3469 = vmatprep.subr.bf16.mxu1 %v3674_v0 }
0x1d77   :  { %v2649_v2 = vpop.xlane.xlu1 %2648 }
0x1d78   :  { %v2653_v58 = vmul.f32 0.03125, %v2649_v2 }
0x1d7a   :  { %v2655_v34 = vsub.f32 %v2645_v4, %v2653_v58 }
0x1d7b   :  { %v2652_v33 = vpop.xlane.xlu0 %2651 }
0x1d7c   :  { %v2654_v7 = vmul.f32 0.03125, %v2652_v33  ;;  %v2657_v36 = vmul.f32 %v2655_v34, %v2655_v34 }
0x1d7e   :  { %v2656_v37 = vsub.f32 %v2646_v8, %v2654_v7  ;;  %v2659_v25 = vsel %vm96_vm1, %v2657_v36, 0.0 }
0x1d7f   :  { %2660 = vadd.xlane.f32.xlu1 %v2659_v25 }
0x1d80   :  { %v2658_v14 = vmul.f32 %v2656_v37, %v2656_v37 }
0x1d82   :  { %v2662_v10 = vsel %vm96_vm1, %v2658_v14, 0.0 }
0x1d83   :  { %2663 = vadd.xlane.f32.xlu0 %v2662_v10 }
0x1e08   :  { %v2661_v40 = vpop.xlane.xlu1 %2660 }
0x1e09   :  { %v2665_v42 = vmul.f32 0.03125, %v2661_v40 }
0x1e0b   :  { %v2667_v5 = vadd.f32 1e-12, %v2665_v42  ;;  %v3512_v42 = vld [vmem:[#allocation5 + $0x8] sm:$0xff]  }
0x1e0c   :  { %v2664_v28 = vpop.xlane.xlu0 %2663 }
0x1e0d   :  { %3590 = vrsqrt.f32 %v2667_v5  ;;  %v2666_v43 = vmul.f32 0.03125, %v2664_v28  ;;  %v3513_v5 = vld [vmem:[#allocation5] sm:$0xff]  }
0x1e0f   :  { %v2668_v44 = vadd.f32 1e-12, %v2666_v43 }
0x1e11   :  { %3592 = vrsqrt.f32 %v2668_v44 }
0x1e1a   :  { %v3591_v45 = vpop.eup %3590 }
0x1e1b   :  { %v2671_v12 = vmul.f32 %v3591_v45, %v2655_v34 }
0x1e1d   :  { %v2677_v51 = vmul.f32 %v2676_v22, %v2671_v12 }
0x1e1e   :  { %v3593_v46 = vpop.eup %3592 }
0x1e1f   :  { %v2672_v47 = vmul.f32 %v3593_v46, %v2656_v37  ;;  %v2683_v49 = vadd.f32 %v2682_v48, %v2677_v51  ;;  %v2878_v51 = vrot.slane %v4288_v17, %v1466_v38 }
0x1e21   :  { %v2678_v1 = vmul.f32 %v2676_v22, %v2672_v47 }
0x1e23   :  { %v2684_v50 = vadd.f32 %v2682_v48, %v2678_v1 }
0x1e25   :  { %v2685_v59 = vpack.c.bf16 %v2684_v50, %v2683_v49 }
0x1e27   :  { %3454 = vmatmul.mubr.msk.bf16.vlgmr.msra.gmra.mxu1 %vm96_vm1, %v2685_v59 }
0x1e28   :  { %3473 = vmatprep.mubr.msk.bf16.mxu1 %vm3675_vm0, %v3674_v0  ;;  %3470 = vmatpush3.bf16.msra.mxu1 %v3512_v42 }
0x1e29   :  { %3471 = vmatprep.subr.bf16.mxu1 %v3674_v0  ;;  %v2884_v0 = vrot.slane %v4288_v17, %v1472_v41 }
0x1e2c   :  { %3472 = vmatpush3.bf16.msra.mxu1 %v3513_v5 }
0x1ee7   :  { %v2748_v55 = vpop.f32.mrf.mxu1 }
0x1ee8   :  { %v2749_v56 = vadd.f32 %v3047_v54, %v2748_v55 }
0x1ee9   :  { %v3455_v60 = vpop.f32.mrf.mxu1 }
0x1eea   :  { %v2757_v61 = vmul.f32 0.70710677, %v2749_v56  ;;  %v2755_v18 = vmul.f32 0.5, %v2749_v56 }
0x1eeb   :  { %v2751_v62 = vpop.f32.mrf.mxu1 }
0x1eec   :  { %3594 = verf.f32 %v2757_v61  ;;  %v2752_v63 = vadd.f32 %v3047_v54, %v2751_v62 }
0x1eed   :  { %v3456_v9 = vpop.f32.mrf.mxu1 }
0x1eee   :  { %v2758_v11 = vmul.f32 0.70710677, %v2752_v63  ;;  %v2756_v19 = vmul.f32 0.5, %v2752_v63 }
0x1ef0   :  { %3596 = verf.f32 %v2758_v11 }
0x1ef9   :  { %v3595_v13 = vpop.eup %3594 }
0x1efa   :  { %v2761_v15 = vadd.f32 1.0, %v3595_v13 }
0x1efc   :  { %v2763_v24 = vmul.f32 %v2761_v15, %v2755_v18 }
0x1efd   :  { %v3597_v16 = vpop.eup %3596 }
0x1efe   :  { %v2762_v21 = vadd.f32 1.0, %v3597_v16 }
0x1f00   :  { %v2764_v26 = vmul.f32 %v2762_v21, %v2756_v19 }
0x1f02   :  { %v2765_v27 = vpack.c.bf16 %v2764_v26, %v2763_v24 }
0x1f04   :  { %3466 = vmatmul.mubr.msk.bf16.vlgmr.msra.gmra.mxu0 %vm1391_vm4, %v2765_v27 }
0x1fc4   :  { %v2840_v4 = vpop.f32.mrf.mxu0 }
0x1fc5   :  { %v2841_v29 = vadd.f32 %v2840_v4, %v2778_v3 }
0x1fc6   :  { %v3467_v30 = vpop.f32.mrf.mxu0 }
0x1fc7   :  { %v2847_v31 = vadd.f32 %v2841_v29, %v2683_v49 }
0x1fc8   :  { %v2843_v8 = vpop.f32.mrf.mxu0 }
0x1fc9   :  { %v2844_v32 = vadd.f32 %v2843_v8, %v2778_v3  ;;  %v2849_v2 = vsel %vm96_vm1, %v2847_v31, 0.0 }
0x1fca   :  { %2850 = vadd.xlane.f32.xlu1 %v2849_v2  ;;  %v3468_v58 = vpop.f32.mrf.mxu0 }
0x1fcb   :  { %v2848_v34 = vadd.f32 %v2844_v32, %v2684_v50 }
0x1fcd   :  { %v2852_v33 = vsel %vm96_vm1, %v2848_v34, 0.0 }
0x1fce   :  { %2853 = vadd.xlane.f32.xlu0 %v2852_v33 }
0x2053   :  { %v2851_v7 = vpop.xlane.xlu1 %2850 }
0x2054   :  { %v2855_v36 = vmul.f32 0.03125, %v2851_v7 }
0x2056   :  { %v2857_v37 = vsub.f32 %v2847_v31, %v2855_v36 }
0x2057   :  { %v2854_v25 = vpop.xlane.xlu0 %2853 }
0x2058   :  { %v2856_v14 = vmul.f32 0.03125, %v2854_v25  ;;  %v2859_v6 = vmul.f32 %v2857_v37, %v2857_v37 }
0x205a   :  { %v2858_v10 = vsub.f32 %v2848_v34, %v2856_v14  ;;  %v2861_v20 = vsel %vm96_vm1, %v2859_v6, 0.0 }
0x205b   :  { %2862 = vadd.xlane.f32.xlu1 %v2861_v20 }
0x205c   :  { %v2860_v39 = vmul.f32 %v2858_v10, %v2858_v10 }
0x205e   :  { %v2864_v40 = vsel %vm96_vm1, %v2860_v39, 0.0 }
0x205f   :  { %2865 = vadd.xlane.f32.xlu0 %v2864_v40 }
0x20e4   :  { %v2863_v28 = vpop.xlane.xlu1 %2862 }
0x20e5   :  { %v2867_v43 = vmul.f32 0.03125, %v2863_v28 }
0x20e7   :  { %v2869_v44 = vadd.f32 1e-12, %v2867_v43 }
0x20e8   :  { %v2866_v45 = vpop.xlane.xlu0 %2865 }
0x20e9   :  { %3598 = vrsqrt.f32 %v2869_v44  ;;  %v2868_v12 = vmul.f32 0.03125, %v2866_v45 }
0x20eb   :  { %v2870_v22 = vadd.f32 1e-12, %v2868_v12 }
0x20ed   :  { %3600 = vrsqrt.f32 %v2870_v22 }
0x20f6   :  { %v3599_v46 = vpop.eup %3598 }
0x20f7   :  { %v2873_v47 = vmul.f32 %v3599_v46, %v2857_v37 }
0x20f9   :  { %v2879_v49 = vmul.f32 %v2878_v51, %v2873_v47 }
0x20fa   :  { %v3601_v48 = vpop.eup %3600 }
0x20fb   :  { %v2874_v1 = vmul.f32 %v3601_v48, %v2858_v10  ;;  %v2885_v59 = vadd.f32 %v2884_v0, %v2879_v49 }
0x20fd   :  { %v2880_v50 = vmul.f32 %v2878_v51, %v2874_v1 }
0x20ff   :  { %v2886_v23 = vadd.f32 %v2884_v0, %v2880_v50 }
0x2101   :  { %v2887_v35 = vpack.c.bf16 %v2886_v23, %v2885_v59 }
0x2103   :  { %3474 = vmatmul.mubr.msk.bf16.vlgmr.msra.gmra.mxu1 %vm96_vm1, %v2887_v35 }
0x21c3   :  { %v2948_v53 = vpop.f32.mrf.mxu1 }
0x21c4   :  { %v2949_v54 = vadd.f32 %v3064_v52, %v2948_v53 }
0x21c5   :  { %v3475_v38 = vpop.f32.mrf.mxu1 }
0x21c6   :  { %2955 = vst [vmem:[#allocation7] sm:$0xff] %v2949_v54 }
0x21c7   :  { %v2951_v55 = vpop.f32.mrf.mxu1 }
0x21c8   :  { %v2952_v57 = vadd.f32 %v3064_v52, %v2951_v55 }
0x21c9   :  { %v3476_v41 = vpop.f32.mrf.mxu1 }
0x21ca   :  { %2956 = vst [vmem:[#allocation7 + $0x8] sm:$0xff] %v2952_v57 }
0x21cb   :  { %3653 = shalt.err (!%p3650_p0)
}
0x21cc   :  { %2968 = dma.vmem_to_hbm [thread:$0]  %s2963_s5, 256, %s4369_s10, [#allocation4], %s3669_s16, %s3669_s16, %s3670_s17  }
0x21cd   :  { %3666 = dma.done.wait [#allocation4], 256  }
0x21ce   :  { %3667 = vsyncadd [#allocation4], 4294967040 }
0x21cf   :  { %2972 = vsyncpa [#allocation3], 1 }
0x21d0   :  { %2973 = vsyncpa [#allocation6], 1 }
0x21d1   :  { %2974 = vsyncpa [#allocation4], 1 }

</bundles_post_ra>
